<compile_context>
chip_gen: v5e
topology: v5e:2x2
jax: 0.10.0
libtpu: 0.0.40
codegen_flags: <defaults>
</compile_context>

<pallas_src>
import functools
import math

import jax
import jax.numpy as jnp
from jax.experimental import pallas as pl
from jax.experimental.pallas import tpu as pltpu

HEAD_PAD = 128  # lane-dense padded head-output width (must be >= 2*action_dim)


# ----------------------------------------------------------------------------
# Packed per-layer vector-parameter layout (lane-aligned segment starts)
# ----------------------------------------------------------------------------
def _vec_layout(H, F):
    segs = [("bqkv", 3 * H), ("bout", H), ("bff1", F), ("bff2", H),
            ("g1", H), ("be1", H), ("g2", H), ("be2", H)]
    layout, off = {}, 0
    for name, width in segs:
        layout[name] = (off, width)
        off += ((width + 127) // 128) * 128   # keep every segment lane-aligned
    return layout, off


# ----------------------------------------------------------------------------
# In-kernel math helpers (fp32)
# ----------------------------------------------------------------------------
def _layer_norm(x, gamma, beta, eps=1e-5):
    # single pass: mean and mean-of-squares (independent reductions)
    m = jnp.mean(x, axis=-1, keepdims=True)
    m2 = jnp.mean(x * x, axis=-1, keepdims=True)
    var = jnp.maximum(m2 - m * m, 0.0)          # biased, like PyTorch LayerNorm
    return (x - m) * jax.lax.rsqrt(var + eps) * gamma + beta


def _softplus(x):
    # PyTorch F.softplus with beta=1, threshold=20
    return jnp.where(x > 20.0, x, jnp.log1p(jnp.exp(jnp.minimum(x, 20.0))))


# ----------------------------------------------------------------------------
# Fused actor+critic kernel.  grid = (branch in {actor, critic}, layer)
# ----------------------------------------------------------------------------
def _fused_kernel(num_layers, num_heads, action_dim, layout, use_fast_exp,
                  state_ref, w_enc_ref, b_enc_ref,
                  wqkv_ref, wout_ref, wff1_ref, wff2_ref, vec_ref,
                  w_head_ref, b_head_ref,
                  out_ref, x_ref):
    branch = pl.program_id(0)   # 0 = actor, 1 = critic
    layer = pl.program_id(1)
    bf16 = jnp.bfloat16

    def seg(name):              # static, lane-aligned slice of the packed block
        off, width = layout[name]
        return vec_ref[:, off:off + width]          # (1, width) fp32

    # -- encoder linear + relu, only at layer 0 (activation carried in scratch)
    @pl.when(layer == 0)
    def _():
        x0 = jnp.dot(state_ref[...].astype(bf16), w_enc_ref[...],
                     preferred_element_type=jnp.float32) + b_enc_ref[...]
        x_ref[...] = jnp.maximum(x0, 0.0)

    x = x_ref[...]                       # (S, H) fp32
    S, H = x.shape
    hd = H // num_heads

    # -- self attention (1/sqrt(hd) pre-folded into wqkv's q columns) ---------
    # TODO(synk): head-major wqkv layout would avoid the (S,H)->(S,h,hd)
    # reshapes (XLU relayouts); negligible at H=32 so kept simple.
    qkv = jnp.dot(x.astype(bf16), wqkv_ref[...],
                  preferred_element_type=jnp.float32) + seg("bqkv")     # (S,3H)
    q = qkv[:, :H].reshape(S, num_heads, hd).astype(bf16)
    k = qkv[:, H:2 * H].reshape(S, num_heads, hd).astype(bf16)
    v = qkv[:, 2 * H:].reshape(S, num_heads, hd).astype(bf16)

    s = jnp.einsum('qhd,khd->hqk', q, k,
                   preferred_element_type=jnp.float32)                  # (h,S,S)
    s = s - jnp.max(s, axis=-1, keepdims=True)
    if use_fast_exp:                    # v6e/v7x: bf16 EUP; values are <= 0
        p = jnp.exp(s.astype(bf16)).astype(jnp.float32)
    else:                               # v5e: no bf16 EUP
        p = jnp.exp(s)
    p = p * pl.reciprocal(jnp.sum(p, axis=-1, keepdims=True), approx=True)
    attn = jnp.einsum('hqk,khd->qhd', p.astype(bf16), v,
                      preferred_element_type=jnp.float32).reshape(S, H)
    attn = jnp.dot(attn.astype(bf16), wout_ref[...],
                   preferred_element_type=jnp.float32) + seg("bout")

    x = _layer_norm(x + attn, seg("g1"), seg("be1"))

    # -- feed-forward ----------------------------------------------------------
    # TODO(synk): int8 (v5e/v6e) / fp8 (v7x) weight streaming would halve the
    # dominant HBM traffic; kept bf16 here to preserve fp32-reference fidelity.
    h1 = jnp.maximum(
        jnp.dot(x.astype(bf16), wff1_ref[...],
                preferred_element_type=jnp.float32) + seg("bff1"), 0.0)
    h2 = jnp.dot(h1.astype(bf16), wff2_ref[...],
                 preferred_element_type=jnp.float32) + seg("bff2")
    x = _layer_norm(x + h2, seg("g2"), seg("be2"))
    x_ref[...] = x

    # -- output heads at the last layer (lane-dense packed slab) --------------
    @pl.when(layer == num_layers - 1)
    def _():
        raw = jnp.dot(x.astype(bf16), w_head_ref[...],
                      preferred_element_type=jnp.float32) + b_head_ref[...]
        col = jax.lax.broadcasted_iota(jnp.int32, raw.shape, 1)
        is_std = jnp.logical_and(col >= action_dim, col < 2 * action_dim)
        # actor branch: columns [0,A)=mean, [A,2A)=softplus(std); critic: raw.
        out_ref[...] = jnp.where(jnp.logical_and(branch == 0, is_std),
                                 _softplus(raw), raw)


# ----------------------------------------------------------------------------
# BlockSpecs: per-layer weight streaming, per-branch selection
# ----------------------------------------------------------------------------
def _in_specs(state_dim, H, F, P, B, VK):
    per_branch = lambda b, l: (b, 0, 0)
    per_layer = lambda b, l: (b, l, 0, 0)
    # TODO(synk): pl.Buffered(3) on wff1/wff2 could further hide DMA latency on
    # v7x; left at the default depth (2) since L is tiny in the demo.
    return [
        pl.BlockSpec((B, state_dim), lambda b, l: (0, 0)),              # state
        pl.BlockSpec((None, state_dim, H), per_branch),                 # w_enc
        pl.BlockSpec((None, 1, H), per_branch),                         # b_enc
        pl.BlockSpec((None, None, H, 3 * H), per_layer),                # wqkv
        pl.BlockSpec((None, None, H, H), per_layer),                    # wout
        pl.BlockSpec((None, None, H, F), per_layer),                    # wff1
        pl.BlockSpec((None, None, F, H), per_layer),                    # wff2
        pl.BlockSpec((None, None, 1, VK), per_layer),                   # packed vec
        pl.BlockSpec((None, H, P), per_branch),                         # w_head
        pl.BlockSpec((None, 1, P), per_branch),                         # b_head
    ]


_PARAM_ORDER = ("w_enc", "b_enc", "wqkv", "wout", "wff1", "wff2", "vec",
                "w_head", "b_head")


# ----------------------------------------------------------------------------
# Host-side wrapper
# ----------------------------------------------------------------------------
def ppo_transformer_forward(state, params, *, num_heads, num_layers, action_dim):
    """Returns (mean, std, value); Normal(mean, std) is the actor distribution."""
    B, state_dim = state.shape
    H = params["w_enc"].shape[-1]
    F = params["wff1"].shape[-1]
    P = params["w_head"].shape[-1]
    VK = params["vec"].shape[-1]
    assert H % num_heads == 0, "hidden_dim must be divisible by num_heads"
    assert 2 * action_dim <= P

    layout, vk_check = _vec_layout(H, F)
    assert vk_check == VK, "packed vec layout mismatch"

    inputs = [state] + [params[k] for k in _PARAM_ORDER]

    # -- generation detection (vmem cap / core-parallel / bf16 exp) -----------
    try:
        kind = jax.devices()[0].device_kind.lower()
    except Exception:
        kind = ""
    is_v7 = "v7" in kind
    use_fast_exp = ("v6" in kind) or is_v7      # bf16 EUP on v6e/v7x only

    # Per-grid-step VMEM block footprint (bytes) -> scoped VMEM limit, with
    # headroom on v7x (64 MiB physical) and a higher ceiling on v5e/v6e.
    blk = (B * state_dim * 4
           + (state_dim * H + H * P) * 2 + (H + P) * 4
           + (H * 3 * H + H * H + H * F + F * H) * 2
           + VK * 4
           + B * P * 4)
    needed = 2 * blk + B * H * 4 + (2 << 20)
    cap = (48 << 20) if is_v7 else (100 << 20)
    vmem_limit = int(min(cap, max(32 << 20, needed)))

    hd = H // num_heads
    flops = 2 * 2 * (B * state_dim * H
                     + num_layers * (B * H * 3 * H + 2 * num_heads * B * B * hd
                                     + B * H * H + 2 * B * H * F)
                     + B * H * P)
    bytes_accessed = int(state.nbytes
                         + sum(params[k].nbytes for k in _PARAM_ORDER)
                         + 2 * B * P * 4)
    cost = pl.CostEstimate(flops=int(flops),
                           transcendentals=int(2 * num_layers * num_heads * B * B),
                           bytes_accessed=bytes_accessed)

    def call(branch_sem):
        return pl.pallas_call(
            functools.partial(_fused_kernel, num_layers, num_heads, action_dim,
                              layout, use_fast_exp),
            out_shape=jax.ShapeDtypeStruct((2, B, P), jnp.float32),
            grid_spec=pltpu.PrefetchScalarGridSpec(
                num_scalar_prefetch=0,
                grid=(2, num_layers),
                in_specs=_in_specs(state_dim, H, F, P, B, VK),
                out_specs=pl.BlockSpec((None, B, P), lambda b, l: (b, 0, 0)),
                scratch_shapes=[pltpu.VMEM((B, H), jnp.float32)]),
            compiler_params=pltpu.CompilerParams(
                dimension_semantics=(branch_sem, pltpu.ARBITRARY),
                vmem_limit_bytes=vmem_limit),
            cost_estimate=cost,
        )(*inputs)

    if is_v7:
        # Actor/critic on separate TensorCores (2 TC/chip on v7x).
        try:
            out = call(pltpu.CORE_PARALLEL)
        except Exception:
            out = call(pltpu.PARALLEL)
    else:
        out = call(pltpu.PARALLEL)

    mean = out[0, :, :action_dim]
    std = out[0, :, action_dim:2 * action_dim]
    value = out[1, :, :1]
    # TODO(synk): torch.distributions.Normal has no Pallas equivalent; we
    # return its parameters (mean, std) instead of a distribution object.
    return mean, std, value


# ----------------------------------------------------------------------------
# Parameter construction (deterministic; shapes follow nn.Module __init__).
# Actor = index 0, critic = index 1 along the leading axis.
# ----------------------------------------------------------------------------
def init_ppo_params(key, state_dim, action_dim, hidden_dim, num_heads,
                    num_layers, ff_dim=2048, head_pad=HEAD_PAD):
    H, F, L, A, P = hidden_dim, ff_dim, num_layers, action_dim, head_pad
    hd = H // num_heads
    f32, bf16 = jnp.float32, jnp.bfloat16
    s = 0.05
    ks = iter(jax.random.split(key, 64))

    def rnd(shape):
        return jax.random.normal(next(ks), shape, f32) * s

    # 1/sqrt(hd) folded into the q columns of wqkv and the q part of bqkv.
    scale = 1.0 / math.sqrt(hd)
    wqkv = rnd((2, L, H, 3 * H))
    wqkv = wqkv.at[..., :H].multiply(scale)
    bqkv = rnd((2, L, 3 * H))
    bqkv = bqkv.at[..., :H].multiply(scale)

    params = {
        "w_enc": rnd((2, state_dim, H)).astype(bf16),
        "b_enc": rnd((2, 1, H)),
        "wqkv": wqkv.astype(bf16),
        "wout": rnd((2, L, H, H)).astype(bf16),
        "wff1": rnd((2, L, H, F)).astype(bf16),
        "wff2": rnd((2, L, F, H)).astype(bf16),
    }

    # Pack the eight small per-layer vector params into one lane-aligned block.
    layout, VK = _vec_layout(H, F)
    vec = jnp.zeros((2, L, 1, VK), f32)

    def put(arr, name, val):
        off, width = layout[name]
        return arr.at[:, :, 0, off:off + width].set(val)

    vec = put(vec, "bqkv", bqkv)
    vec = put(vec, "bout", rnd((2, L, H)))
    vec = put(vec, "bff1", rnd((2, L, F)))
    vec = put(vec, "bff2", rnd((2, L, H)))
    vec = put(vec, "g1", jnp.ones((2, L, H), f32))
    vec = put(vec, "g2", jnp.ones((2, L, H), f32))
    # be1 / be2 stay zero.
    params["vec"] = vec

    # Packed, lane-dense heads: actor -> [mean | std | 0-pad], critic -> [value | 0-pad]
    w_mean = rnd((H, A)); b_mean = rnd((A,))
    w_std = rnd((H, A));  b_std = rnd((A,))
    w_val = rnd((H, 1));  b_val = rnd((1,))

    w_head = jnp.zeros((2, H, P), f32)
    w_head = w_head.at[0, :, :A].set(w_mean).at[0, :, A:2 * A].set(w_std)
    w_head = w_head.at[1, :, :1].set(w_val)
    b_head = jnp.zeros((2, 1, P), f32)
    b_head = b_head.at[0, 0, :A].set(b_mean).at[0, 0, A:2 * A].set(b_std)
    b_head = b_head.at[1, 0, :1].set(b_val)

    params["w_head"] = w_head.astype(bf16)
    params["b_head"] = b_head
    return params


# ----------------------------------------------------------------------------
# Demo
# ----------------------------------------------------------------------------
if __name__ == "__main__":
    state_dim, action_dim, hidden_dim = 16, 4, 32
    num_heads, num_layers = 4, 2
    batch = 8  # also the attention sequence length (see layout comment)

    key = jax.random.PRNGKey(0)
    k_params, k_state = jax.random.split(key)
    params = init_ppo_params(k_params, state_dim, action_dim, hidden_dim,
                             num_heads, num_layers)
    state = jax.random.normal(k_state, (batch, state_dim), jnp.float32)

    mean, std, value = ppo_transformer_forward(
        state, params, num_heads=num_heads, num_layers=num_layers,
        action_dim=action_dim)
    jax.block_until_ready((mean, std, value))

    assert mean.shape == (batch, action_dim)
    assert std.shape == (batch, action_dim)
    assert value.shape == (batch, 1)
    assert bool(jnp.all(jnp.isfinite(mean)))
    assert bool(jnp.all(jnp.isfinite(std))) and bool(jnp.all(std > 0))
    assert bool(jnp.all(jnp.isfinite(value)))
    print("KERNEL_OK")
</pallas_src>

<mosaic_0001>
module attributes {stable_mosaic.version = 11 : i64} {
  func.func @_fused_kernel(%arg0: i32, %arg1: i32, %arg2: memref<8x16xf32, #tpu.memory_space<vmem>>, %arg3: memref<1x16x32xbf16, #tpu.memory_space<vmem>>, %arg4: memref<1x1x32xf32, #tpu.memory_space<vmem>>, %arg5: memref<1x1x32x96xbf16, #tpu.memory_space<vmem>>, %arg6: memref<1x1x32x32xbf16, #tpu.memory_space<vmem>>, %arg7: memref<1x1x32x2048xbf16, #tpu.memory_space<vmem>>, %arg8: memref<1x1x2048x32xbf16, #tpu.memory_space<vmem>>, %arg9: memref<1x1x1x2944xf32, #tpu.memory_space<vmem>>, %arg10: memref<1x32x128xbf16, #tpu.memory_space<vmem>>, %arg11: memref<1x1x128xf32, #tpu.memory_space<vmem>>, %arg12: memref<1x8x128xf32, #tpu.memory_space<vmem>>, %arg13: memref<8x32xf32, #tpu.memory_space<vmem>>) attributes {dimension_semantics = [#tpu.dimension_semantics<parallel>, #tpu.dimension_semantics<arbitrary>], iteration_bounds = array<i64: 2, 2>, scalar_prefetch = 0 : i64, scratch_operands = 1 : i64, tpu.core_type = #tpu.core_type<tc>, window_params = [{pipeline_mode = #tpu.pipeline_mode<synchronous>, transform_indices = @transform_0, window_bounds = array<i64: 8, 16>}, {transform_indices = @transform_1, window_bounds = array<i64: 1, 16, 32>}, {transform_indices = @transform_2, window_bounds = array<i64: 1, 1, 32>}, {transform_indices = @transform_3, window_bounds = array<i64: 1, 1, 32, 96>}, {transform_indices = @transform_4, window_bounds = array<i64: 1, 1, 32, 32>}, {transform_indices = @transform_5, window_bounds = array<i64: 1, 1, 32, 2048>}, {transform_indices = @transform_6, window_bounds = array<i64: 1, 1, 2048, 32>}, {transform_indices = @transform_7, window_bounds = array<i64: 1, 1, 1, 2944>}, {transform_indices = @transform_8, window_bounds = array<i64: 1, 32, 128>}, {transform_indices = @transform_9, window_bounds = array<i64: 1, 1, 128>}, {transform_indices = @transform_10, window_bounds = array<i64: 1, 8, 128>}]} {
    %c0_i32 = arith.constant 0 : i32
    %0 = arith.cmpi eq, %arg1, %c0_i32 : i32
    %1 = arith.extui %0 : i1 to i32
    %c0_i32_0 = arith.constant 0 : i32
    %2 = arith.cmpi ne, %1, %c0_i32_0 : i32
    scf.if %2 {
      %c0_66 = arith.constant 0 : index
      %c0_67 = arith.constant 0 : index
      %124 = vector.load %arg2[%c0_66, %c0_67] : memref<8x16xf32, #tpu.memory_space<vmem>>, vector<8x16xf32>
      %125 = arith.truncf %124 : vector<8x16xf32> to vector<8x16xbf16>
      %c0_68 = arith.constant 0 : index
      %c0_69 = arith.constant 0 : index
      %c0_70 = arith.constant 0 : index
      %126 = vector.load %arg3[%c0_68, %c0_69, %c0_70] : memref<1x16x32xbf16, #tpu.memory_space<vmem>>, vector<1x16x32xbf16>
      %127 = vector.shape_cast %126 : vector<1x16x32xbf16> to vector<16x32xbf16>
      %cst_71 = arith.constant dense<0.000000e+00> : vector<8x32xf32>
      %128 = tpu.matmul %125, %127, %cst_71 {dimension_numbers = #tpu.dot_dimension_numbers<[1], [0], [0], [1], [0, 0, 1, 1], [], []>} : vector<8x16xbf16>, vector<16x32xbf16>, vector<8x32xf32> -> vector<8x32xf32>
      %c0_72 = arith.constant 0 : index
      %c0_73 = arith.constant 0 : index
      %c0_74 = arith.constant 0 : index
      %129 = vector.load %arg4[%c0_72, %c0_73, %c0_74] : memref<1x1x32xf32, #tpu.memory_space<vmem>>, vector<1x1x32xf32>
      %130 = vector.shape_cast %129 : vector<1x1x32xf32> to vector<1x32xf32>
      %131 = vector.broadcast %130 : vector<1x32xf32> to vector<8x32xf32>
      %132 = arith.addf %128, %131 : vector<8x32xf32>
      %cst_75 = arith.constant 0.000000e+00 : f32
      %133 = vector.broadcast %cst_75 : f32 to vector<8x32xf32>
      %134 = arith.maximumf %132, %133 : vector<8x32xf32>
      %c0_76 = arith.constant 0 : index
      %c0_77 = arith.constant 0 : index
      %135 = vector.load %arg13[%c0_76, %c0_77] : memref<8x32xf32, #tpu.memory_space<vmem>>, vector<8x32xf32>
      tpu.vector_store %arg13[%c0_76, %c0_77], %134 {strides = array<i32>} : memref<8x32xf32, #tpu.memory_space<vmem>>, vector<8x32xf32>,
    } else {
    }
    %c0 = arith.constant 0 : index
    %c0_1 = arith.constant 0 : index
    %3 = vector.load %arg13[%c0, %c0_1] : memref<8x32xf32, #tpu.memory_space<vmem>>, vector<8x32xf32>
    %4 = arith.truncf %3 : vector<8x32xf32> to vector<8x32xbf16>
    %c0_2 = arith.constant 0 : index
    %c0_3 = arith.constant 0 : index
    %c0_4 = arith.constant 0 : index
    %c0_5 = arith.constant 0 : index
    %5 = vector.load %arg5[%c0_2, %c0_3, %c0_4, %c0_5] : memref<1x1x32x96xbf16, #tpu.memory_space<vmem>>, vector<1x1x32x96xbf16>
    %6 = vector.shape_cast %5 : vector<1x1x32x96xbf16> to vector<32x96xbf16>
    %cst = arith.constant dense<0.000000e+00> : vector<8x96xf32>
    %7 = tpu.matmul %4, %6, %cst {dimension_numbers = #tpu.dot_dimension_numbers<[1], [0], [0], [1], [0, 0, 1, 1], [], []>} : vector<8x32xbf16>, vector<32x96xbf16>, vector<8x96xf32> -> vector<8x96xf32>
    %c0_6 = arith.constant 0 : index
    %c0_7 = arith.constant 0 : index
    %c0_8 = arith.constant 0 : index
    %c0_9 = arith.constant 0 : index
    %8 = vector.load %arg9[%c0_6, %c0_7, %c0_8, %c0_9] : memref<1x1x1x2944xf32, #tpu.memory_space<vmem>>, vector<1x1x1x96xf32>
    %9 = vector.shape_cast %8 : vector<1x1x1x96xf32> to vector<1x96xf32>
    %10 = vector.broadcast %9 : vector<1x96xf32> to vector<8x96xf32>
    %11 = arith.addf %7, %10 : vector<8x96xf32>
    %12 = vector.extract_strided_slice %11 {offsets = [0, 0], sizes = [8, 32], strides = [1, 1]} : vector<8x96xf32> to vector<8x32xf32>
    %13 = vector.shape_cast %12 : vector<8x32xf32> to vector<8x4x8xf32>
    %14 = arith.truncf %13 : vector<8x4x8xf32> to vector<8x4x8xbf16>
    %15 = vector.extract_strided_slice %11 {offsets = [0, 32], sizes = [8, 32], strides = [1, 1]} : vector<8x96xf32> to vector<8x32xf32>
    %16 = vector.shape_cast %15 : vector<8x32xf32> to vector<8x4x8xf32>
    %17 = arith.truncf %16 : vector<8x4x8xf32> to vector<8x4x8xbf16>
    %18 = vector.extract_strided_slice %11 {offsets = [0, 64], sizes = [8, 32], strides = [1, 1]} : vector<8x96xf32> to vector<8x32xf32>
    %19 = vector.shape_cast %18 : vector<8x32xf32> to vector<8x4x8xf32>
    %20 = arith.truncf %19 : vector<8x4x8xf32> to vector<8x4x8xbf16>
    "tpu.trace_start"() <{level = 10 : i32, message = "qhd,khd->hqk"}> : () -> ()
    %cst_10 = arith.constant dense<0.000000e+00> : vector<4x8x8xf32>
    %21 = tpu.matmul %14, %17, %cst_10 {dimension_numbers = #tpu.dot_dimension_numbers<[2], [2], [0], [0], [0, 1, 0, 0, 1, 0], [1], [1]>} : vector<8x4x8xbf16>, vector<8x4x8xbf16>, vector<4x8x8xf32> -> vector<4x8x8xf32>
    "tpu.trace_stop"() : () -> ()
    %cst_11 = arith.constant dense<0xFF800000> : vector<4x8xf32>
    %22 = vector.multi_reduction <maximumf>, %21, %cst_11 [2] : vector<4x8x8xf32> to vector<4x8xf32>
    %23 = vector.shape_cast %22 : vector<4x8xf32> to vector<4x8x1xf32>
    %24 = vector.broadcast %23 : vector<4x8x1xf32> to vector<4x8x8xf32>
    %25 = arith.subf %21, %24 : vector<4x8x8xf32>
    %26 = math.exp %25 : vector<4x8x8xf32>
    %cst_12 = arith.constant dense<0.000000e+00> : vector<4x8xf32>
    %27 = vector.multi_reduction <add>, %26, %cst_12 [2] : vector<4x8x8xf32> to vector<4x8xf32>
    %28 = vector.shape_cast %27 : vector<4x8xf32> to vector<4x8x1xf32>
    %29 = tpu.reciprocal %28 {approx = true} : vector<4x8x1xf32> -> vector<4x8x1xf32>
    %30 = vector.broadcast %29 : vector<4x8x1xf32> to vector<4x8x8xf32>
    %31 = arith.mulf %26, %30 : vector<4x8x8xf32>
    %32 = arith.truncf %31 : vector<4x8x8xf32> to vector<4x8x8xbf16>
    "tpu.trace_start"() <{level = 10 : i32, message = "hqk,khd->qhd"}> : () -> ()
    %cst_13 = arith.constant dense<0.000000e+00> : vector<4x8x8xf32>
    %33 = tpu.matmul %20, %32, %cst_13 {dimension_numbers = #tpu.dot_dimension_numbers<[0], [2], [2], [1], [0, 1, 0, 2, 1, 1], [1], [0]>} : vector<8x4x8xbf16>, vector<4x8x8xbf16>, vector<4x8x8xf32> -> vector<4x8x8xf32>
    %34 = tpu.transpose %33, [2, 0, 1] : vector<4x8x8xf32> -> vector<8x4x8xf32>
    "tpu.trace_stop"() : () -> ()
    %35 = vector.shape_cast %34 : vector<8x4x8xf32> to vector<8x32xf32>
    %36 = arith.truncf %35 : vector<8x32xf32> to vector<8x32xbf16>
    %c0_14 = arith.constant 0 : index
    %c0_15 = arith.constant 0 : index
    %c0_16 = arith.constant 0 : index
    %c0_17 = arith.constant 0 : index
    %37 = vector.load %arg6[%c0_14, %c0_15, %c0_16, %c0_17] : memref<1x1x32x32xbf16, #tpu.memory_space<vmem>>, vector<1x1x32x32xbf16>
    %38 = vector.shape_cast %37 : vector<1x1x32x32xbf16> to vector<32x32xbf16>
    %cst_18 = arith.constant dense<0.000000e+00> : vector<8x32xf32>
    %39 = tpu.matmul %36, %38, %cst_18 {dimension_numbers = #tpu.dot_dimension_numbers<[1], [0], [0], [1], [0, 0, 1, 1], [], []>} : vector<8x32xbf16>, vector<32x32xbf16>, vector<8x32xf32> -> vector<8x32xf32>
    %c0_19 = arith.constant 0 : index
    %c0_20 = arith.constant 0 : index
    %c0_21 = arith.constant 0 : index
    %c128 = arith.constant 128 : index
    %40 = vector.load %arg9[%c0_19, %c0_20, %c0_21, %c128] : memref<1x1x1x2944xf32, #tpu.memory_space<vmem>>, vector<1x1x1x32xf32>
    %41 = vector.shape_cast %40 : vector<1x1x1x32xf32> to vector<1x32xf32>
    %42 = vector.broadcast %41 : vector<1x32xf32> to vector<8x32xf32>
    %43 = arith.addf %39, %42 : vector<8x32xf32>
    %44 = arith.addf %3, %43 : vector<8x32xf32>
    %c0_22 = arith.constant 0 : index
    %c0_23 = arith.constant 0 : index
    %c0_24 = arith.constant 0 : index
    %c2432 = arith.constant 2432 : index
    %45 = vector.load %arg9[%c0_22, %c0_23, %c0_24, %c2432] : memref<1x1x1x2944xf32, #tpu.memory_space<vmem>>, vector<1x1x1x32xf32>
    %46 = vector.shape_cast %45 : vector<1x1x1x32xf32> to vector<1x32xf32>
    %c0_25 = arith.constant 0 : index
    %c0_26 = arith.constant 0 : index
    %c0_27 = arith.constant 0 : index
    %c2560 = arith.constant 2560 : index
    %47 = vector.load %arg9[%c0_25, %c0_26, %c0_27, %c2560] : memref<1x1x1x2944xf32, #tpu.memory_space<vmem>>, vector<1x1x1x32xf32>
    %48 = vector.shape_cast %47 : vector<1x1x1x32xf32> to vector<1x32xf32>
    %cst_28 = arith.constant dense<0.000000e+00> : vector<8xf32>
    %49 = vector.multi_reduction <add>, %44, %cst_28 [1] : vector<8x32xf32> to vector<8xf32>
    %50 = vector.shape_cast %49 : vector<8xf32> to vector<8x1xf32>
    %cst_29 = arith.constant 3.200000e+01 : f32
    %51 = vector.broadcast %cst_29 : f32 to vector<8x1xf32>
    %52 = arith.divf %50, %51 : vector<8x1xf32>
    %53 = arith.mulf %44, %44 : vector<8x32xf32>
    %cst_30 = arith.constant dense<0.000000e+00> : vector<8xf32>
    %54 = vector.multi_reduction <add>, %53, %cst_30 [1] : vector<8x32xf32> to vector<8xf32>
    %55 = vector.shape_cast %54 : vector<8xf32> to vector<8x1xf32>
    %cst_31 = arith.constant 3.200000e+01 : f32
    %56 = vector.broadcast %cst_31 : f32 to vector<8x1xf32>
    %57 = arith.divf %55, %56 : vector<8x1xf32>
    %58 = arith.mulf %52, %52 : vector<8x1xf32>
    %59 = arith.subf %57, %58 : vector<8x1xf32>
    %cst_32 = arith.constant 0.000000e+00 : f32
    %60 = vector.broadcast %cst_32 : f32 to vector<8x1xf32>
    %61 = arith.maximumf %59, %60 : vector<8x1xf32>
    %62 = vector.broadcast %52 : vector<8x1xf32> to vector<8x32xf32>
    %63 = arith.subf %44, %62 : vector<8x32xf32>
    %cst_33 = arith.constant 9.99999974E-6 : f32
    %64 = vector.broadcast %cst_33 : f32 to vector<8x1xf32>
    %65 = arith.addf %61, %64 : vector<8x1xf32>
    %66 = math.rsqrt %65 : vector<8x1xf32>
    %67 = vector.broadcast %66 : vector<8x1xf32> to vector<8x32xf32>
    %68 = arith.mulf %63, %67 : vector<8x32xf32>
    %69 = vector.broadcast %46 : vector<1x32xf32> to vector<8x32xf32>
    %70 = arith.mulf %68, %69 : vector<8x32xf32>
    %71 = vector.broadcast %48 : vector<1x32xf32> to vector<8x32xf32>
    %72 = arith.addf %70, %71 : vector<8x32xf32>
    %73 = arith.truncf %72 : vector<8x32xf32> to vector<8x32xbf16>
    %c0_34 = arith.constant 0 : index
    %c0_35 = arith.constant 0 : index
    %c0_36 = arith.constant 0 : index
    %c0_37 = arith.constant 0 : index
    %74 = vector.load %arg7[%c0_34, %c0_35, %c0_36, %c0_37] : memref<1x1x32x2048xbf16, #tpu.memory_space<vmem>>, vector<1x1x32x2048xbf16>
    %75 = vector.shape_cast %74 : vector<1x1x32x2048xbf16> to vector<32x2048xbf16>
    %cst_38 = arith.constant dense<0.000000e+00> : vector<8x2048xf32>
    %76 = tpu.matmul %73, %75, %cst_38 {dimension_numbers = #tpu.dot_dimension_numbers<[1], [0], [0], [1], [0, 0, 1, 1], [], []>} : vector<8x32xbf16>, vector<32x2048xbf16>, vector<8x2048xf32> -> vector<8x2048xf32>
    %c0_39 = arith.constant 0 : index
    %c0_40 = arith.constant 0 : index
    %c0_41 = arith.constant 0 : index
    %c256 = arith.constant 256 : index
    %77 = vector.load %arg9[%c0_39, %c0_40, %c0_41, %c256] : memref<1x1x1x2944xf32, #tpu.memory_space<vmem>>, vector<1x1x1x2048xf32>
    %78 = vector.shape_cast %77 : vector<1x1x1x2048xf32> to vector<1x2048xf32>
    %79 = vector.broadcast %78 : vector<1x2048xf32> to vector<8x2048xf32>
    %80 = arith.addf %76, %79 : vector<8x2048xf32>
    %cst_42 = arith.constant 0.000000e+00 : f32
    %81 = vector.broadcast %cst_42 : f32 to vector<8x2048xf32>
    %82 = arith.maximumf %80, %81 : vector<8x2048xf32>
    %83 = arith.truncf %82 : vector<8x2048xf32> to vector<8x2048xbf16>
    %c0_43 = arith.constant 0 : index
    %c0_44 = arith.constant 0 : index
    %c0_45 = arith.constant 0 : index
    %c0_46 = arith.constant 0 : index
    %84 = vector.load %arg8[%c0_43, %c0_44, %c0_45, %c0_46] : memref<1x1x2048x32xbf16, #tpu.memory_space<vmem>>, vector<1x1x2048x32xbf16>
    %85 = vector.shape_cast %84 : vector<1x1x2048x32xbf16> to vector<2048x32xbf16>
    %cst_47 = arith.constant dense<0.000000e+00> : vector<8x32xf32>
    %86 = tpu.matmul %83, %85, %cst_47 {dimension_numbers = #tpu.dot_dimension_numbers<[1], [0], [0], [1], [0, 0, 1, 1], [], []>} : vector<8x2048xbf16>, vector<2048x32xbf16>, vector<8x32xf32> -> vector<8x32xf32>
    %c0_48 = arith.constant 0 : index
    %c0_49 = arith.constant 0 : index
    %c0_50 = arith.constant 0 : index
    %c2304 = arith.constant 2304 : index
    %87 = vector.load %arg9[%c0_48, %c0_49, %c0_50, %c2304] : memref<1x1x1x2944xf32, #tpu.memory_space<vmem>>, vector<1x1x1x32xf32>
    %88 = vector.shape_cast %87 : vector<1x1x1x32xf32> to vector<1x32xf32>
    %89 = vector.broadcast %88 : vector<1x32xf32> to vector<8x32xf32>
    %90 = arith.addf %86, %89 : vector<8x32xf32>
    %91 = arith.addf %72, %90 : vector<8x32xf32>
    %c0_51 = arith.constant 0 : index
    %c0_52 = arith.constant 0 : index
    %c0_53 = arith.constant 0 : index
    %c2688 = arith.constant 2688 : index
    %92 = vector.load %arg9[%c0_51, %c0_52, %c0_53, %c2688] : memref<1x1x1x2944xf32, #tpu.memory_space<vmem>>, vector<1x1x1x32xf32>
    %93 = vector.shape_cast %92 : vector<1x1x1x32xf32> to vector<1x32xf32>
    %c0_54 = arith.constant 0 : index
    %c0_55 = arith.constant 0 : index
    %c0_56 = arith.constant 0 : index
    %c2816 = arith.constant 2816 : index
    %94 = vector.load %arg9[%c0_54, %c0_55, %c0_56, %c2816] : memref<1x1x1x2944xf32, #tpu.memory_space<vmem>>, vector<1x1x1x32xf32>
    %95 = vector.shape_cast %94 : vector<1x1x1x32xf32> to vector<1x32xf32>
    %cst_57 = arith.constant dense<0.000000e+00> : vector<8xf32>
    %96 = vector.multi_reduction <add>, %91, %cst_57 [1] : vector<8x32xf32> to vector<8xf32>
    %97 = vector.shape_cast %96 : vector<8xf32> to vector<8x1xf32>
    %cst_58 = arith.constant 3.200000e+01 : f32
    %98 = vector.broadcast %cst_58 : f32 to vector<8x1xf32>
    %99 = arith.divf %97, %98 : vector<8x1xf32>
    %100 = arith.mulf %91, %91 : vector<8x32xf32>
    %cst_59 = arith.constant dense<0.000000e+00> : vector<8xf32>
    %101 = vector.multi_reduction <add>, %100, %cst_59 [1] : vector<8x32xf32> to vector<8xf32>
    %102 = vector.shape_cast %101 : vector<8xf32> to vector<8x1xf32>
    %cst_60 = arith.constant 3.200000e+01 : f32
    %103 = vector.broadcast %cst_60 : f32 to vector<8x1xf32>
    %104 = arith.divf %102, %103 : vector<8x1xf32>
    %105 = arith.mulf %99, %99 : vector<8x1xf32>
    %106 = arith.subf %104, %105 : vector<8x1xf32>
    %cst_61 = arith.constant 0.000000e+00 : f32
    %107 = vector.broadcast %cst_61 : f32 to vector<8x1xf32>
    %108 = arith.maximumf %106, %107 : vector<8x1xf32>
    %109 = vector.broadcast %99 : vector<8x1xf32> to vector<8x32xf32>
    %110 = arith.subf %91, %109 : vector<8x32xf32>
    %cst_62 = arith.constant 9.99999974E-6 : f32
    %111 = vector.broadcast %cst_62 : f32 to vector<8x1xf32>
    %112 = arith.addf %108, %111 : vector<8x1xf32>
    %113 = math.rsqrt %112 : vector<8x1xf32>
    %114 = vector.broadcast %113 : vector<8x1xf32> to vector<8x32xf32>
    %115 = arith.mulf %110, %114 : vector<8x32xf32>
    %116 = vector.broadcast %93 : vector<1x32xf32> to vector<8x32xf32>
    %117 = arith.mulf %115, %116 : vector<8x32xf32>
    %118 = vector.broadcast %95 : vector<1x32xf32> to vector<8x32xf32>
    %119 = arith.addf %117, %118 : vector<8x32xf32>
    %c0_63 = arith.constant 0 : index
    %c0_64 = arith.constant 0 : index
    %120 = vector.load %arg13[%c0_63, %c0_64] : memref<8x32xf32, #tpu.memory_space<vmem>>, vector<8x32xf32>
    tpu.vector_store %arg13[%c0_63, %c0_64], %119 {strides = array<i32>} : memref<8x32xf32, #tpu.memory_space<vmem>>, vector<8x32xf32>,
    %c1_i32 = arith.constant 1 : i32
    %121 = arith.cmpi eq, %arg1, %c1_i32 : i32
    %122 = arith.extui %121 : i1 to i32
    %c0_i32_65 = arith.constant 0 : i32
    %123 = arith.cmpi ne, %122, %c0_i32_65 : i32
    scf.if %123 {
      %124 = arith.truncf %119 : vector<8x32xf32> to vector<8x32xbf16>
      %c0_66 = arith.constant 0 : index
      %c0_67 = arith.constant 0 : index
      %c0_68 = arith.constant 0 : index
      %125 = vector.load %arg10[%c0_66, %c0_67, %c0_68] : memref<1x32x128xbf16, #tpu.memory_space<vmem>>, vector<1x32x128xbf16>
      %126 = vector.shape_cast %125 : vector<1x32x128xbf16> to vector<32x128xbf16>
      %cst_69 = arith.constant dense<0.000000e+00> : vector<8x128xf32>
      %127 = tpu.matmul %124, %126, %cst_69 {dimension_numbers = #tpu.dot_dimension_numbers<[1], [0], [0], [1], [0, 0, 1, 1], [], []>} : vector<8x32xbf16>, vector<32x128xbf16>, vector<8x128xf32> -> vector<8x128xf32>
      %c0_70 = arith.constant 0 : index
      %c0_71 = arith.constant 0 : index
      %c0_72 = arith.constant 0 : index
      %128 = vector.load %arg11[%c0_70, %c0_71, %c0_72] : memref<1x1x128xf32, #tpu.memory_space<vmem>>, vector<1x1x128xf32>
      %129 = vector.shape_cast %128 : vector<1x1x128xf32> to vector<1x128xf32>
      %130 = vector.broadcast %129 : vector<1x128xf32> to vector<8x128xf32>
      %131 = arith.addf %127, %130 : vector<8x128xf32>
      %132 = tpu.iota {dimensions = array<i32: 1>} : vector<8x128xi32>
      %c4_i32 = arith.constant 4 : i32
      %133 = vector.broadcast %c4_i32 : i32 to vector<8x128xi32>
      %134 = arith.cmpi sge, %132, %133 : vector<8x128xi32>
      %c8_i32 = arith.constant 8 : i32
      %135 = vector.broadcast %c8_i32 : i32 to vector<8x128xi32>
      %136 = arith.cmpi slt, %132, %135 : vector<8x128xi32>
      %137 = arith.andi %134, %136 : vector<8x128xi1>
      %c0_i32_73 = arith.constant 0 : i32
      %138 = arith.cmpi eq, %arg0, %c0_i32_73 : i32
      %139 = vector.broadcast %138 : i1 to vector<8x128xi1>
      %140 = arith.andi %139, %137 : vector<8x128xi1>
      %cst_74 = arith.constant 2.000000e+01 : f32
      %141 = vector.broadcast %cst_74 : f32 to vector<8x128xf32>
      %142 = arith.cmpf ogt, %131, %141 : vector<8x128xf32>
      %cst_75 = arith.constant 2.000000e+01 : f32
      %143 = vector.broadcast %cst_75 : f32 to vector<8x128xf32>
      %144 = arith.minimumf %131, %143 : vector<8x128xf32>
      %145 = math.exp %144 : vector<8x128xf32>
      %146 = math.log1p %145 : vector<8x128xf32>
      %147 = arith.select %142, %131, %146 : vector<8x128xi1>, vector<8x128xf32>
      %148 = arith.select %140, %147, %131 : vector<8x128xi1>, vector<8x128xf32>
      %c0_76 = arith.constant 0 : index
      %c0_77 = arith.constant 0 : index
      %c0_78 = arith.constant 0 : index
      %149 = vector.load %arg12[%c0_76, %c0_77, %c0_78] : memref<1x8x128xf32, #tpu.memory_space<vmem>>, vector<1x8x128xf32>
      %150 = vector.shape_cast %149 : vector<1x8x128xf32> to vector<8x128xf32>
      %151 = vector.shape_cast %148 : vector<8x128xf32> to vector<1x8x128xf32>
      tpu.vector_store %arg12[%c0_76, %c0_77, %c0_78], %151 {strides = array<i32>} : memref<1x8x128xf32, #tpu.memory_space<vmem>>, vector<1x8x128xf32>,
    } else {
    }
    return
  }
  func.func @transform_0(%arg0: i32, %arg1: i32) -> (i32, i32) {
    %c0_i32 = arith.constant 0 : i32
    %c0_i32_0 = arith.constant 0 : i32
    %c0_i32_1 = arith.constant 0 : i32
    return %c0_i32, %c0_i32_0 : i32, i32
  }
  func.func @transform_1(%arg0: i32, %arg1: i32) -> (i32, i32, i32) {
    %c0_i32 = arith.constant 0 : i32
    %c0_i32_0 = arith.constant 0 : i32
    %c0_i32_1 = arith.constant 0 : i32
    return %arg0, %c0_i32, %c0_i32_0 : i32, i32, i32
  }
  func.func @transform_2(%arg0: i32, %arg1: i32) -> (i32, i32, i32) {
    %c0_i32 = arith.constant 0 : i32
    %c0_i32_0 = arith.constant 0 : i32
    %c0_i32_1 = arith.constant 0 : i32
    return %arg0, %c0_i32, %c0_i32_0 : i32, i32, i32
  }
  func.func @transform_3(%arg0: i32, %arg1: i32) -> (i32, i32, i32, i32) {
    %c0_i32 = arith.constant 0 : i32
    %c0_i32_0 = arith.constant 0 : i32
    %c0_i32_1 = arith.constant 0 : i32
    return %arg0, %arg1, %c0_i32, %c0_i32_0 : i32, i32, i32, i32
  }
  func.func @transform_4(%arg0: i32, %arg1: i32) -> (i32, i32, i32, i32) {
    %c0_i32 = arith.constant 0 : i32
    %c0_i32_0 = arith.constant 0 : i32
    %c0_i32_1 = arith.constant 0 : i32
    return %arg0, %arg1, %c0_i32, %c0_i32_0 : i32, i32, i32, i32
  }
  func.func @transform_5(%arg0: i32, %arg1: i32) -> (i32, i32, i32, i32) {
    %c0_i32 = arith.constant 0 : i32
    %c0_i32_0 = arith.constant 0 : i32
    %c0_i32_1 = arith.constant 0 : i32
    return %arg0, %arg1, %c0_i32, %c0_i32_0 : i32, i32, i32, i32
  }
  func.func @transform_6(%arg0: i32, %arg1: i32) -> (i32, i32, i32, i32) {
    %c0_i32 = arith.constant 0 : i32
    %c0_i32_0 = arith.constant 0 : i32
    %c0_i32_1 = arith.constant 0 : i32
    return %arg0, %arg1, %c0_i32, %c0_i32_0 : i32, i32, i32, i32
  }
  func.func @transform_7(%arg0: i32, %arg1: i32) -> (i32, i32, i32, i32) {
    %c0_i32 = arith.constant 0 : i32
    %c0_i32_0 = arith.constant 0 : i32
    %c0_i32_1 = arith.constant 0 : i32
    return %arg0, %arg1, %c0_i32, %c0_i32_0 : i32, i32, i32, i32
  }
  func.func @transform_8(%arg0: i32, %arg1: i32) -> (i32, i32, i32) {
    %c0_i32 = arith.constant 0 : i32
    %c0_i32_0 = arith.constant 0 : i32
    %c0_i32_1 = arith.constant 0 : i32
    return %arg0, %c0_i32, %c0_i32_0 : i32, i32, i32
  }
  func.func @transform_9(%arg0: i32, %arg1: i32) -> (i32, i32, i32) {
    %c0_i32 = arith.constant 0 : i32
    %c0_i32_0 = arith.constant 0 : i32
    %c0_i32_1 = arith.constant 0 : i32
    return %arg0, %c0_i32, %c0_i32_0 : i32, i32, i32
  }
  func.func @transform_10(%arg0: i32, %arg1: i32) -> (i32, i32, i32) {
    %c0_i32 = arith.constant 0 : i32
    %c0_i32_0 = arith.constant 0 : i32
    %c0_i32_1 = arith.constant 0 : i32
    return %arg0, %c0_i32, %c0_i32_0 : i32, i32, i32
  }
}

</mosaic_0001>

<bundles_post_ra>
// kernel: tpu_custom_call.1
= control target key start
LH: loop header
LB: loop body
LE: loop exit
PB: predicated region body
PF: predicated region fallthrough
CT: control target
= control target key end

     0   :  { %s6315_s0 = inlined_call_operand.vmem [shape: f32[8,16], index: 0, kind: input, shape index: {}]   ;;  %s6316_s1 = inlined_call_operand.vmem [shape: bf16[2,16,32], index: 1, kind: input, shape index: {}]   ;;  %s6317_s2 = inlined_call_operand.vmem [shape: f32[2,1,32], index: 2, kind: input, shape index: {}]   ;;  %s6318_s3 = inlined_call_operand.vmem [shape: bf16[2,2,32,96], index: 3, kind: input, shape index: {}]   ;;  %s6319_s4 = inlined_call_operand.vmem [shape: bf16[2,2,32,32], index: 4, kind: input, shape index: {}]   ;;  %s6320_s5 = inlined_call_operand.vmem [shape: bf16[2,2,32,2048], index: 5, kind: input, shape index: {}]   ;;  %s6321_s6 = inlined_call_operand.vmem [shape: bf16[2,2,2048,32], index: 6, kind: input, shape index: {}]   ;;  %s6322_s7 = inlined_call_operand.vmem [shape: f32[2,2,1,2944], index: 7, kind: input, shape index: {}]   ;;  %s6323_s8 = inlined_call_operand.vmem [shape: bf16[2,32,128], index: 8, kind: input, shape index: {}]   ;;  %s6324_s9 = inlined_call_operand.vmem [shape: f32[2,1,128], index: 9, kind: input, shape index: {}]   ;;  %s6325_s10 = inlined_call_operand.hbm [shape: f32[2,8,128], index: 10, kind: output, shape index: {}]  }
   0x1   :  { %6342 = sst [smem:[#allocation20_spill]] %s6316_s1 }
   0x2   :  { %6343 = sst [smem:[#allocation21_spill]] %s6317_s2 }
   0x3   :  { %6344 = sst [smem:[#allocation22_spill]] %s6318_s3 }
   0x4   :  { %6345 = sst [smem:[#allocation23_spill]] %s6319_s4 }
   0x5   :  { %6346 = sst [smem:[#allocation24_spill]] %s6325_s10 }
   0x6   :  { %15 = vsyncpa [#allocation4], 0 }
   0x7   :  { %17 = vsyncpa [#allocation4 + $0x1], 0  ;;  %s5561_s13 = smov 0   ;;  %s5563_s14 = smov 0  }
   0x8   :  { %s5565_s15 = smov 0   ;;  %s5567_s16 = smov 0  }
   0x9   :  { %s5569_s17 = smov 0   ;;  %s5571_s18 = smov 0  }
   0xa   :  { %s5573_s19 = smov 0   ;;  %s5575_s20 = smov 0  }
   0xb LB: > { %6347 = sst [smem:[#allocation6_spill]] %s5465_s13  ;;  %s4302_s21 = sadd.s32 4294967295, %s5493_s20   ;;  %s5493_s20 = sphi %s5575_s20, %s23_s20   ;;  %s5489_s19 = sphi %s5573_s19, %s6386_s19   ;;  %s5485_s18 = sphi %s5571_s18, %s6385_s18   ;;  %s5481_s17 = sphi %s5569_s17, %s6384_s17   ;;  %s5477_s16 = sphi %s5567_s16, %s6383_s16   ;;  %s5473_s15 = sphi %s5565_s15, %s6382_s15   ;;  %s5469_s14 = sphi %s5563_s14, %s6381_s14   ;;  %s5465_s13 = sphi %s5561_s13, %s6380_s13  }
   0xc   : > { %6348 = sst [smem:[#allocation7_spill]] %s5469_s14  ;;  %s4303_s22 = sadd.s32 4294967294, %s5493_s20  }
   0xd   : > { %6349 = sst [smem:[#allocation8_spill]] %s5473_s15  ;;  %s32_s23 = sadd.s32 1, %s5485_s18 }
   0xe   : > { %6350 = sst [smem:[#allocation9_spill]] %s5481_s17  ;;  %p33_p0 = scmp.ge.s32.totalorder %s32_s23, 2 }
   0xf   : > { %6351 = sst [smem:[#allocation10_spill]] %s5485_s18  ;;  %s35_s24 = sadd.s32 1, %s5489_s19 }
  0x10   : > { %6352 = sst [smem:[#allocation11_spill]] %s5489_s19  ;;  %p317_p1 = scmp.ne.s32.totalorder %s5473_s15, %s5469_s14 }
  0x11   : > { %6353 = sst [smem:[#allocation12_spill]] %s5493_s20  ;;  %p318_p2 = scmp.eq.s32.totalorder %s4302_s21, 3 }
  0x12   : > { %s6388_s23 = smov (%p33_p0, %s32_s23), 0  ;;  %s6390_s24 = smov (!%p33_p0, %s35_s24), %s5489_s19 }
  0x13   : > { %6354 = sst [smem:[#allocation13_spill]] %s6388_s23  ;;  %p5610_p3 = por %p318_p2, %p317_p1 }
  0x14   : > { %p323_p4 = scmp.ne.s32.totalorder %s5469_s14, %s5465_s13  ;;  %p37_p5 = scmp.ge.s32.totalorder %s6390_s24, 2 }
  0x15   : > { %s6355_s25 = scalar_select %p5610_p3, 1, 0 }
  0x16   : > { %p324_p6 = scmp.eq.s32.totalorder %s4303_s22, 3  ;;  %p4306_p7 = scmp.ge.s32.totalorder %s5493_s20, 1 }
  0x17   : > { %6356 = sst [smem:[#allocation14_spill]] %s6355_s25  ;;  %p432_p8 = scmp.lt.s32.totalorder %s5493_s20, 5 }
  0x18   : > { %s6392_s24 = smov (%p37_p5, %s6390_s24), 0  ;;  %p5620_p9 = por %p324_p6, %p323_p4 }
  0x19   : > { %6357 = sst [smem:[#allocation15_spill]] %s6392_s24  ;;  %p433_p10 = pnand %p4306_p7, %p432_p8 }
  0x1a   : > { %s6358_s26 = scalar_select %p5620_p9, 1, 0 }
  0x1b   : > { %s304_s27 = ssub.s32 %s5489_s19, %s6392_s24  ;;  %s307_s28 = sadd.s32 1, %s5473_s15 }
  0x1c   : > { %6359 = sst [smem:[#allocation16_spill]] %s6358_s26  ;;  %p305_p11 = scmp.eq.s32.totalorder %s304_s27, 0 }
  0x1d   : > { %436 = sbr.rel (%p433_p10) target bundleno = 3118 (0xc2e), region = 60 }
  0x1e   : > { %s5628_s29 = scalar_select %p305_p11, %s5473_s15, %s307_s28  }
  0x20   : > { %6360 = sst [smem:[#allocation17_spill]] %s5628_s29 }
  0x22   : > { %s6329_s30 = sand.u32 1, %s5469_s14   ;;  %p525_p12 = scmp.lt.s32.totalorder %s5481_s17, 1 }
  0x23   : > { %s5634_s11 = sshll.u32 %s6329_s30, 3  ;;  %p535_p13 = scmp.lt.s32.totalorder %s5477_s16, 1 }
  0x24   : > { %s5638_s12 = scalar_select %p525_p12, %s5481_s17, 1 }
  0x25   : > { %s536_s21 = scalar_select %p535_p13, %s5477_s16, 1 }
  0x26   : > { %s5026_s22 = sshll.u32 %s5638_s12, 3  ;;  %s6362_s1 = sld [smem:[#allocation20_spill]] }
  0x27   : > { %s4310_s29 = sshll.u32 %s536_s21, 2  ;;  %s4316_s15 = sshll.u32 %s536_s21, 6 }
  0x28   : > { %s539_s30 = sadd.s32 %s5026_s22, %s4310_s29  ;;  %s4317_s13 = sshll.u32 %s5638_s12, 7 }
  0x29   : > { %s4312_s26 = sshll.u32 %s539_s30, 2  ;;  %s6363_s3 = sld [smem:[#allocation22_spill]] }
  0x2a   : > { %s6365_s4 = sld [smem:[#allocation23_spill]]  ;;  %s557_s19 = sadd.s32 %s4317_s13, %s4316_s15 }
  0x2b   : > { %s4319_s23 = sshll.u32 %s536_s21, 8  ;;  %s4318_s24 = sshll.u32 %s557_s19, 2 }
  0x2c   : > { %s529_s18 = scalar_lea.vmem %s6362_s1, %s5026_s22  ;;  %s4320_s29 = sshll.u32 %s5638_s12, 9 }
  0x2d   : > { %s5664_s30 = scalar_lea.vmem %s6320_s5, %s4318_s24  ;;  %s566_s17 = sadd.s32 %s4320_s29, %s4319_s23 }
  0x2e   : > { %s4321_s2 = sshll.u32 %s566_s17, 2  ;;  %s5195_s10 = smul.u32 23, %s536_s21 }
  0x2f   : > { %s5653_s25 = scalar_lea.vmem %s6363_s3, %s4312_s26  ;;  %s5196_s14 = smul.u32 46, %s5638_s12 }
  0x30   : > { %6364 = sst [smem:[#allocation18_spill]] %s5653_s25  ;;  %s5658_s28 = scalar_lea.vmem %s6365_s4, %s4312_s26 }
  0x31   : > { %6366 = sst [smem:[#allocation19_spill]] %s5658_s28  ;;  %s5669_s25 = scalar_lea.vmem %s6321_s6, %s4321_s2 }
  0x32   : > { %s5027_s26 = sshll.u32 %s5638_s12, 4  ;;  %s584_s15 = scalar_lea.vmem %s6324_s9, %s5638_s12 }
  0x33   : > { %s575_s19 = sadd.s32 %s5196_s14, %s5195_s10  ;;  %s5680_s1 = scalar_lea.vmem %s6323_s8, %s5027_s26 }
  0x34   : > { %s5685_s21 = scalar_lea.vmem %s6322_s7, %s575_s19  ;;  %s524_s3 = scalar_lea.vmem [#allocation3], %s5634_s11 }
  0x35   : > { %p4324_p0 = scmp.ne.s32.totalorder %s5477_s16, 0 }
  0x36   : > { %s6367_s29 = sld [smem:[#allocation21_spill]] (!%p4324_p0) }
  0x37   : > { %589 = sbr.rel (%p4324_p0) target bundleno = 198 (0xc6), region = 64 }
  0x3c   : > { %v5028_v0 = vld [vmem:[%s529_s18] sm:$0xff]  ;;  %vm604_vm0 = vcmask 130048   ;;  %s6368_s22 = scalar_lea.vmem %s6367_s29, %s5638_s12  ;;  %vm622_vm1 = vcmask 261120  }
  0x3d   : > { %v590_v1 = vld [vmem:[%s6315_s0] sm:$0xff]  ;;  %615 = vmatpush.bf16.msra.mxu0 %v5028_v0 }
  0x3e   : > { %v591_v2 = vpack.c.bf16 %v590_v1, %v590_v1  ;;  %v5281_v3 = vld [vmem:[%s6368_s22] ss:$0 sm:$0xff] }
  0x40   : > { %4329 = vmatmul.msk.bf16.vlgmr.msra.gmra.mxu0 %vm604_vm0, %v591_v2 }
  0xbd   : > { %v617_v4 = vpop.f32.mrf.mxu0 }
  0xbe   : > { %v618_v5 = vadd.f32 %v5281_v3, %v617_v4 }
  0xc0   : > { %v621_v6 = vmax.f32 %v618_v5, 0.0 }
  0xc2   : > { %623 = vst.msk [vmem:[#allocation2] sm:$0xff] %vm622_vm1, %v621_v6 }
  0xc5   : > { %v619_v7 = vpop.f32.mrf.mxu0 }
  0xc6 PF: > { %s6369_s18 = sld [smem:[#allocation18_spill]]  ;;  %vm646_vm2 = vcmask 261120   ;;  %v5364_v12 = vld [vmem:[%s5685_s21] ss:$0 sm:$0xff]  ;;  %s5495_s10 = smov 112   ;;  %vm674_vm3 = vcmask 1047556  }
  0xc7   : > { %s5496_s20 = smov 120   ;;  %s5497_s14 = smov 104   ;;  %v5499_v24 = vmov 1983009808   ;;  %v5500_v32 = vmov 1934713408  }
  0xc8   : > { %s5498_s26 = smov 96   ;;  %v679_v25 = vunpack.c.l.s4 %v5499_v24  ;;  %v703_v33 = vunpack.c.l.s4 %v5500_v32  ;;  %s5501_s27 = smov 64   ;;  %vm1343_vm4 = vcmask 1043456   ;;  %vm1339_vm5 = vcmask 64512  }
  0xc9   : > { %v624_v10 = vld [vmem:[#allocation2] sm:$0xff]  ;;  %s6370_s13 = sld [smem:[#allocation19_spill]]  ;;  %s5502_s19 = smov 24   ;;  %vm2188_vm6 = vcmask 130048   ;;  %vm2190_vm7 = vcmask 195584  }
  0xca   : > { %v625_v11 = vpack.c.bf16 %v624_v10, %v624_v10  ;;  %v5722_v31 = vunpack.c.0.s8 %v679_v25  ;;  %v5732_v45 = vunpack.c.0.s8 %v703_v33  ;;  %s5503_s24 = smov 16   ;;  %s5504_s17 = smov 8  }
  0xcb   : > { %p5012_p1 = scmp.ne.s32.totalorder %s5477_s16, 1 }
  0xcc   : > { %v5030_v8 = vld [vmem:[%s6369_s18 + $0x8] sm:$0xff]  ;;  %v5029_v9 = vld [vmem:[%s6369_s18] sm:$0xff] }
  0xcd   : > { %656 = vmatpush.bf16.msra.mxu0 %v5030_v8 }
  0xd1   : > { %657 = vmatpush.bf16.msra.mxu0 %v5029_v9 }
  0xd4   : > { %4338 = vmatmul.msk.bf16.vlgmr.msra.gmra.mxu0 %vm646_vm2, %v625_v11 }
 0x151   : > { %v659_v13 = vpop.f32.mrf.mxu0 }
 0x152   : > { %v5701_v14 = vadd.f32 %v5364_v12, %v659_v13 }
 0x154   : > { %667 = vrot.lane.b32.xlu1 %v5701_v14, %s5495_s10  ;;  %664 = vrot.lane.b32.xlu0 %v5701_v14, %s5496_s20 }
 0x159   : > { %v661_v15 = vpop.f32.mrf.mxu0 }
 0x15c   : > { %670 = vrot.lane.b32.xlu0 %v5701_v14, %s5497_s14 }
 0x1c6   : > { %v5706_v16 = vpop.permute.xlu0 %664  ;;  %v5713_v18 = vpop.permute.xlu1 %667 }
 0x1c7   : > { %v5710_v17 = vpack.i.bf16 %v5701_v14, %v5706_v16 }
 0x1c9   : > { %5283 = vrot.lane.b32.xlu1 %v5710_v17, %s5498_s26 }
 0x1ce   : > { %v5715_v19 = vpop.permute.xlu0 %670 }
 0x1cf   : > { %v5719_v20 = vpack.i.bf16 %v5713_v18, %v5715_v19 }
 0x1d1   : > { %5288 = vrot.lane.b32.xlu2 %v5719_v20, %s5498_s26 }
 0x22b   : > { %v5289_v21 = vpop.permute.xlu2 %5288 }
 0x22c   : > { %v5291_v22 = vunpack.i.h.bf16 %v5289_v21  ;;  %v5290_v23 = vunpack.i.l.bf16 %v5289_v21 }
 0x22e   : > { %v750_v27 = vrot.slane %v5291_v22, 4  ;;  %v762_v28 = vrot.slane %v5290_v23, 4 }
 0x23b   : > { %v5284_v26 = vpop.permute.xlu1 %5283 }
 0x23c   : > { %v5286_v29 = vunpack.i.h.bf16 %v5284_v26  ;;  %v5285_v30 = vunpack.i.l.bf16 %v5284_v26 }
 0x23e   : > { %v752_v34 = vrot.slane %v5286_v29, 4  ;;  %v751_v35 = vsel %vm674_vm3, %v750_v27, %v5286_v29  ;;  %v763_v36 = vsel %vm674_vm3, %v762_v28, %v5285_v30  ;;  %v764_v37 = vrot.slane %v5285_v30, 4 }
 0x23f   : > { %v769_v38 = vperm.slane %v763_v36, %v5722_v31  ;;  %v757_v41 = vperm.slane %v751_v35, %v5722_v31 }
 0x240   : > { %v753_v39 = vsel %vm674_vm3, %v5291_v22, %v752_v34  ;;  %v765_v40 = vsel %vm674_vm3, %v5290_v23, %v764_v37 }
 0x241   : > { %v761_v42 = vperm.slane %v753_v39, %v5722_v31  ;;  %v773_v43 = vperm.slane %v765_v40, %v5722_v31  ;;  %v774_v44 = vrot.slane %v769_v38, 4  ;;  %v776_v60 = vrot.slane %v757_v41, 4 }
 0x243   : > { %v786_v46 = vrot.slane %v773_v43, 4  ;;  %v788_v47 = vrot.slane %v761_v42, 4  ;;  %v775_v48 = vsel %vm674_vm3, %v774_v44, %v757_v41  ;;  %v777_v3 = vsel %vm674_vm3, %v769_v38, %v776_v60 }
 0x244   : > { %v781_v49 = vperm.slane %v775_v48, %v5732_v45  ;;  %v785_v4 = vperm.slane %v777_v3, %v5732_v45 }
 0x245   : > { %v789_v50 = vsel %vm674_vm3, %v773_v43, %v788_v47  ;;  %v787_v51 = vsel %vm674_vm3, %v786_v46, %v761_v42 }
 0x246   : > { %v798_v52 = vrot.slane %v781_v49, 4  ;;  %v797_v53 = vperm.slane %v789_v50, %v5732_v45  ;;  %v793_v54 = vperm.slane %v787_v51, %v5732_v45  ;;  %v806_v58 = vpack.c.bf16 %v781_v49, %v781_v49 }
 0x247   : > { %v800_v5 = vrot.slane %v785_v4, 4  ;;  %v808_v7 = vpack.c.bf16 %v785_v4, %v785_v4 }
 0x248   : > { %v799_v55 = vsel %vm674_vm3, 0.0, %v798_v52  ;;  %v804_v56 = vrot.slane %v797_v53, 4  ;;  %v802_v57 = vrot.slane %v793_v54, 4  ;;  %v812_v63 = vpack.c.bf16 %v797_v53, %v797_v53 }
 0x249   : > { %v807_v59 = vpack.c.bf16 %v799_v55, %v799_v55  ;;  %v810_v2 = vpack.c.bf16 %v793_v54, %v793_v54  ;;  %v801_v6 = vsel %vm674_vm3, 0.0, %v800_v5 }
 0x24a   : > { %v805_v61 = vsel %vm674_vm3, 0.0, %v804_v56  ;;  %v803_v62 = vsel %vm674_vm3, 0.0, %v802_v57  ;;  %v809_v8 = vpack.c.bf16 %v801_v6, %v801_v6 }
 0x24b   : > { %5298 = vxpose.binary.xlu0.c.b16.start.end [1/2] (short) (narrow) %v807_v59, %v806_v58, 16  ;;  %v813_v0 = vpack.c.bf16 %v805_v61, %v805_v61  ;;  %v811_v1 = vpack.c.bf16 %v803_v62, %v803_v62 }
 0x24d   : > { %5292 = vxpose.binary.xlu1.c.b16.start.end [1/2] (short) (narrow) %v813_v0, %v812_v63, 16 }
 0x24e   : > { %5295 = vxpose.binary.xlu2.c.b16.start.end [1/2] (short) (narrow) %v811_v1, %v810_v2, 16 }
 0x25e   : > { %5301 = vxpose.binary.xlu2.c.b16.start.end [1/2] (short) (narrow) %v809_v8, %v808_v7, 16  ;;  %v676_v8 = vrot.slane %v5701_v14, 4 }
 0x2c7   : > { %5308 = vrot.lane.b32.xlu2 %v5710_v17, %s5501_s27 }
 0x2ef   : > { %v5296_v9 = vpop.trf.xlu2 }
 0x2f0   : > { %v1071_v13 = vrot.slane %v5296_v9, 4  ;;  %v673_v9 = vrot.slane %v5713_v18, 4 }
 0x2f7   : > { %v5297_v10 = vpop.trf.xlu2  ;;  %v5299_v11 = vpop.trf.xlu0 }
 0x2f8   : > { %v1072_v21 = vsel %vm674_vm3, %v1071_v13, %v5299_v11  ;;  %v1099_v24 = vrot.slane %v5297_v10, 4  ;;  %v677_v10 = vsel %vm674_vm3, %v5713_v18, %v676_v8  ;;  %v688_v11 = vrot.slane %v5706_v16, 4 }
 0x2f9   : > { %v5293_v12 = vpop.trf.xlu1  ;;  %v1076_v26 = vperm.slane %v1072_v21, %v5722_v31  ;;  %v675_v21 = vsel %vm674_vm3, %v673_v9, %v5701_v14 }
 0x2fa   : > { %v1077_v15 = vrot.slane %v5293_v12, 4  ;;  %v686_v12 = vrot.slane %v5715_v19, 4  ;;  %v689_v13 = vsel %vm674_vm3, %v5715_v19, %v688_v11 }
 0x2fb   : > { %v1085_v32 = vrot.slane %v1076_v26, 4 }
 0x2ff   : > { %v5302_v22 = vpop.trf.xlu2  ;;  %v5300_v23 = vpop.trf.xlu0 }
 0x300   : > { %v1078_v25 = vsel %vm674_vm3, %v1077_v15, %v5302_v22  ;;  %v1100_v17 = vsel %vm674_vm3, %v1099_v24, %v5300_v23  ;;  %v685_v15 = vperm.slane %v677_v10, %v5722_v31  ;;  %v687_v22 = vsel %vm674_vm3, %v686_v12, %v5706_v16 }
 0x301   : > { %v1082_v27 = vperm.slane %v1078_v25, %v5722_v31  ;;  %v5294_v28 = vpop.trf.xlu1  ;;  %v1104_v34 = vperm.slane %v1100_v17, %v5722_v31  ;;  %v681_v23 = vperm.slane %v675_v21, %v5722_v31  ;;  %v693_v24 = vperm.slane %v687_v22, %v5722_v31 }
 0x302   : > { %v1105_v30 = vrot.slane %v5294_v28, 4  ;;  %v712_v18 = vrot.slane %v685_v15, 4 }
 0x303   : > { %v1083_v29 = vrot.slane %v1082_v27, 4  ;;  %v1086_v35 = vsel %vm674_vm3, %v1082_v27, %v1085_v32  ;;  %v1113_v39 = vrot.slane %v1104_v34, 4  ;;  %v700_v27 = vrot.slane %v681_v23, 4 }
 0x304   : > { %v1094_v41 = vperm.slane %v1086_v35, %v5732_v45  ;;  %v698_v28 = vrot.slane %v693_v24, 4 }
 0x305   : > { %v1084_v33 = vsel %vm674_vm3, %v1083_v29, %v1076_v26  ;;  %v701_v17 = vsel %vm674_vm3, %v693_v24, %v700_v27 }
 0x306   : > { %v1090_v37 = vperm.slane %v1084_v33, %v5732_v45  ;;  %v1147_v48 = vshrl.u32 %v1094_v41, 16  ;;  %v1097_v1 = vrot.slane %v1094_v41, 4  ;;  %v699_v33 = vsel %vm674_vm3, %v698_v28, %v681_v23 }
 0x307   : > { %v5303_v36 = vpop.trf.xlu2 }
 0x308   : > { %v1106_v38 = vsel %vm674_vm3, %v1105_v30, %v5303_v36  ;;  %v1095_v44 = vrot.slane %v1090_v37, 4  ;;  %v1131_v51 = vshrl.u32 %v1090_v37, 16  ;;  %v1098_v3 = vsel %vm674_vm3, 0, %v1097_v1 }
 0x309   : > { %v1110_v40 = vperm.slane %v1106_v38, %v5722_v31  ;;  %v1155_v5 = vshrl.u32 %v1098_v3, 16  ;;  %v709_v30 = vperm.slane %v701_v17, %v5732_v45 }
 0x30a   : > { %v1096_v52 = vsel %vm674_vm3, 0, %v1095_v44 }
 0x30b   : > { %v1111_v42 = vrot.slane %v1110_v40, 4  ;;  %v1114_v43 = vsel %vm674_vm3, %v1110_v40, %v1113_v39  ;;  %v1139_v60 = vshrl.u32 %v1096_v52, 16  ;;  %v724_v35 = vrot.slane %v709_v30, 4 }
 0x30c   : > { %v1122_v46 = vperm.slane %v1114_v43, %v5732_v45 }
 0x30d   : > { %v1112_v47 = vsel %vm674_vm3, %v1111_v42, %v1104_v34  ;;  %v705_v34 = vperm.slane %v699_v33, %v5732_v45  ;;  %v725_v43 = vsel %vm674_vm3, 0.0, %v724_v35 }
 0x30e   : > { %v1148_v49 = vshrl.u32 %v1122_v46, 16  ;;  %v1118_v50 = vperm.slane %v1112_v47, %v5732_v45  ;;  %v1145_v53 = vpack.i.b16 %v1122_v46, %v1094_v41  ;;  %v1125_v0 = vrot.slane %v1122_v46, 4 }
 0x30f   : > { %v722_v41 = vrot.slane %v705_v34, 4 }
 0x310   : > { %v1149_v54 = vpack.i.b16 %v1148_v49, %v1147_v48  ;;  %v1132_v55 = vshrl.u32 %v1118_v50, 16  ;;  %v1123_v56 = vrot.slane %v1118_v50, 4  ;;  %v1129_v57 = vpack.i.b16 %v1118_v50, %v1090_v37 }
 0x311   : > { %v1126_v2 = vsel %vm674_vm3, 0, %v1125_v0  ;;  %v733_v48 = vpack.c.bf16 %v725_v43, %v725_v43  ;;  %v723_v50 = vsel %vm674_vm3, 0.0, %v722_v41 }
 0x312   : > { %5312 = vxpose.binary.xlu0.c.b16.start.end [1/2] (short) (narrow) %v1149_v54, %v1145_v53, 16  ;;  %v1133_v58 = vpack.i.b16 %v1132_v55, %v1131_v51  ;;  %v1124_v59 = vsel %vm674_vm3, 0, %v1123_v56  ;;  %v1156_v4 = vshrl.u32 %v1126_v2, 16  ;;  %v1153_v6 = vpack.i.b16 %v1126_v2, %v1098_v3 }
 0x313   : > { %v1140_v61 = vshrl.u32 %v1124_v59, 16  ;;  %v1137_v62 = vpack.i.b16 %v1124_v59, %v1096_v52  ;;  %v732_v51 = vpack.c.bf16 %v709_v30, %v709_v30 }
 0x314   : > { %5304 = vxpose.binary.xlu1.c.b16.start.end [1/2] (short) (narrow) %v1133_v58, %v1129_v57, 16  ;;  %v1157_v7 = vpack.i.b16 %v1156_v4, %v1155_v5  ;;  %v731_v58 = vpack.c.bf16 %v723_v50, %v723_v50 }
 0x315   : > { %v1141_v63 = vpack.i.b16 %v1140_v61, %v1139_v60 }
 0x317   : > { %5315 = vxpose.binary.xlu2.c.b16.start.end [1/2] (short) (narrow) %v1141_v63, %v1137_v62, 16  ;;  %v730_v62 = vpack.c.bf16 %v705_v34, %v705_v34 }
 0x321   : > { %v5795_v38 = vpop.permute.xlu2 %5308 }
 0x322   : > { %5318 = vxpose.binary.xlu0.c.b16.start.end [1/2] (short) (narrow) %v1157_v7, %v1153_v6, 16 }
 0x390   : > { %5322 = vrot.lane.b32.xlu0 %v5719_v20, %s5501_s27  ;;  %v697_v20 = vperm.slane %v689_v13, %v5722_v31 }
 0x392   : > { %v710_v25 = vrot.slane %v697_v20, 4  ;;  %v713_v26 = vsel %vm674_vm3, %v697_v20, %v712_v18 }
 0x393   : > { %v721_v19 = vperm.slane %v713_v26, %v5732_v45 }
 0x394   : > { %v711_v14 = vsel %vm674_vm3, %v710_v25, %v685_v15 }
 0x395   : > { %v717_v16 = vperm.slane %v711_v14, %v5732_v45  ;;  %v728_v32 = vrot.slane %v721_v19, 4  ;;  %v736_v44 = vpack.c.bf16 %v721_v19, %v721_v19 }
 0x397   : > { %v726_v36 = vrot.slane %v717_v16, 4  ;;  %v729_v37 = vsel %vm674_vm3, 0.0, %v728_v32  ;;  %v734_v52 = vpack.c.bf16 %v717_v16, %v717_v16  ;;  %v897_v53 = vrot.slane %v736_v44, 4 }
 0x398   : > { %v737_v39 = vpack.c.bf16 %v729_v37, %v729_v37 }
 0x399   : > { %v727_v42 = vsel %vm674_vm3, 0.0, %v726_v36  ;;  %v890_v61 = vrot.slane %v734_v52, 4  ;;  %v898_v63 = vsel %vm674_vm3, %v897_v53, %v732_v51 }
 0x39a   : > { %v735_v46 = vpack.c.bf16 %v727_v42, %v727_v42  ;;  %v917_v47 = vrot.slane %v737_v39, 4  ;;  %v902_v5 = vperm.slane %v898_v63, %v5722_v31  ;;  %v5310_v63 = vunpack.i.l.bf16 %v5795_v38 }
 0x39b   : > { %v892_v8 = vsel %vm674_vm3, %v890_v61, %v730_v62  ;;  %v5311_v62 = vunpack.i.h.bf16 %v5795_v38 }
 0x39c   : > { %v911_v56 = vrot.slane %v735_v46, 4  ;;  %v918_v59 = vsel %vm674_vm3, %v917_v47, %v733_v48  ;;  %v896_v22 = vperm.slane %v892_v8, %v5722_v31  ;;  %v903_v23 = vrot.slane %v902_v5, 4 }
 0x39d   : > { %v922_v2 = vperm.slane %v918_v59, %v5722_v31 }
 0x39e   : > { %v912_v4 = vsel %vm674_vm3, %v911_v56, %v731_v58  ;;  %v904_v19 = vsel %vm674_vm3, %v903_v23, %v896_v22 }
 0x39f   : > { %v916_v11 = vperm.slane %v912_v4, %v5722_v31  ;;  %v923_v12 = vrot.slane %v922_v2, 4  ;;  %v908_v16 = vperm.slane %v904_v19, %v5732_v45  ;;  %v840_v2 = vrot.slane %v5310_v63, 4 }
 0x3a1   : > { %v924_v26 = vsel %vm674_vm3, %v923_v12, %v916_v11  ;;  %v934_v51 = vshrl.u32 %v908_v16, 16 }
 0x3a2   : > { %v928_v14 = vperm.slane %v924_v26, %v5732_v45 }
 0x3a4   : > { %v929_v34 = vrot.slane %v928_v14, 4  ;;  %v935_v44 = vshrl.u32 %v928_v14, 16  ;;  %v933_v50 = vpack.i.b16 %v928_v14, %v908_v16 }
 0x3a6   : > { %v930_v52 = vsel %vm674_vm3, 0, %v929_v34 }
 0x3a7   : > { %v941_v59 = vshrl.u32 %v930_v52, 16 }
 0x3b8   : > { %v5316_v49 = vpop.trf.xlu2 }
 0x3be   : > { %v5313_v29 = vpop.trf.xlu0 }
 0x3bf   : > { %v1287_v55 = vrot.slane %v5313_v29, 4 }
 0x3c0   : > { %v5305_v54 = vpop.trf.xlu1  ;;  %v5317_v10 = vpop.trf.xlu2 }
 0x3c1   : > { %v1288_v0 = vsel %vm674_vm3, %v1287_v55, %v5305_v54  ;;  %v936_v55 = vpack.i.b16 %v935_v44, %v934_v51 }
 0x3c2   : > { %v1292_v6 = vperm.slane %v1288_v0, %v5722_v31 }
 0x3c6   : > { %v5314_v40 = vpop.trf.xlu0 }
 0x3c7   : > { %v1307_v9 = vrot.slane %v5314_v40, 4  ;;  %v909_v40 = vrot.slane %v908_v16, 4 }
 0x3c8   : > { %v5306_v13 = vpop.trf.xlu1 }
 0x3c9   : > { %v1308_v18 = vsel %vm674_vm3, %v1307_v9, %v5306_v13  ;;  %v910_v56 = vsel %vm674_vm3, 0, %v909_v40 }
 0x3ca   : > { %v1312_v28 = vperm.slane %v1308_v18, %v5722_v31  ;;  %v939_v58 = vpack.i.b16 %v930_v52, %v910_v56 }
 0x3ce   : > { %v5319_v57 = vpop.trf.xlu0 }
 0x3cf   : > { %v1293_v60 = vrot.slane %v5319_v57, 4 }
 0x3d1   : > { %v1294_v1 = vsel %vm674_vm3, %v1293_v60, %v5316_v49  ;;  %v940_v60 = vshrl.u32 %v910_v56, 16 }
 0x3d2   : > { %v1298_v3 = vperm.slane %v1294_v1, %v5722_v31  ;;  %v828_v1 = vrot.slane %v5311_v62, 4 }
 0x3d3   : > { %v942_v61 = vpack.i.b16 %v941_v59, %v940_v60 }
 0x3d4   : > { %v1299_v7 = vrot.slane %v1298_v3, 4 }
 0x3d6   : > { %v5320_v15 = vpop.trf.xlu0  ;;  %v1300_v21 = vsel %vm674_vm3, %v1299_v7, %v1292_v6 }
 0x3d7   : > { %v1313_v20 = vrot.slane %v5320_v15, 4  ;;  %v1304_v25 = vperm.slane %v1300_v21, %v5732_v45 }
 0x3d9   : > { %v1314_v24 = vsel %vm674_vm3, %v1313_v20, %v5317_v10  ;;  %v1305_v29 = vrot.slane %v1304_v25, 4  ;;  %v1330_v33 = vshrl.u32 %v1304_v25, 16 }
 0x3da   : > { %v1318_v27 = vperm.slane %v1314_v24, %v5722_v31 }
 0x3db   : > { %v1306_v37 = vsel %vm674_vm3, 0, %v1305_v29 }
 0x3dc   : > { %v1319_v17 = vrot.slane %v1318_v27, 4  ;;  %v1336_v47 = vshrl.u32 %v1306_v37, 16 }
 0x3de   : > { %v1320_v30 = vsel %vm674_vm3, %v1319_v17, %v1312_v28 }
 0x3df   : > { %v1324_v32 = vperm.slane %v1320_v30, %v5732_v45 }
 0x3e1   : > { %v1329_v35 = vpack.i.b16 %v1324_v32, %v1304_v25  ;;  %v1331_v36 = vshrl.u32 %v1324_v32, 16  ;;  %v1325_v39 = vrot.slane %v1324_v32, 4 }
 0x3e3   : > { %v1345_v41 = vsel %vm1343_vm4, %v1329_v35, 0  ;;  %v1332_v42 = vpack.i.b16 %v1331_v36, %v1330_v33  ;;  %v1326_v43 = vsel %vm674_vm3, 0, %v1325_v39 }
 0x3e4   : > { %1354 = vmatpush.bf16.msra.mxu1 %v1345_v41  ;;  %v1335_v46 = vpack.i.b16 %v1326_v43, %v1306_v37  ;;  %v1337_v48 = vshrl.u32 %v1326_v43, 16 }
 0x3e5   : > { %v1364_v49 = vsel %vm1343_vm4, %v1332_v42, 0 }
 0x3e6   : > { %1373 = vmatpush.bf16.msra.mxu2 %v1364_v49  ;;  %v1383_v53 = vsel %vm1343_vm4, %v1335_v46, 0  ;;  %v1338_v54 = vpack.i.b16 %v1337_v48, %v1336_v47 }
 0x3e7   : > { %4339 = vmatmul.msk.bf16.vlgmr.msra.gmra.mxu1 %vm1339_vm5, %v933_v50  ;;  %1392 = vmatpush.bf16.msra.mxu3 %v1383_v53 }
 0x3e8   : > { %v1402_v57 = vsel %vm1343_vm4, %v1338_v54, 0 }
 0x3e9   : > { %4340 = vmatmul.msk.bf16.vlgmr.msra.gmra.mxu2 %vm1339_vm5, %v936_v55  ;;  %1411 = vmatpush.bf16.msrb.mxu1 %v1402_v57 }
 0x3ea   : > { %4341 = vmatmul.msk.bf16.vlgmr.msra.gmra.mxu3 %vm1339_vm5, %v939_v58 }
 0x3f7   : > { %4342 = vmatmul.msk.bf16.vlgmr.msrb.gmra.mxu1 %vm1339_vm5, %v942_v61 }
 0x402   : > { %v5323_v0 = vpop.permute.xlu0 %5322 }
 0x403   : > { %v5325_v3 = vunpack.i.h.bf16 %v5323_v0  ;;  %v5324_v4 = vunpack.i.l.bf16 %v5323_v0 }
 0x405   : > { %v826_v5 = vrot.slane %v5325_v3, 4  ;;  %v829_v6 = vsel %vm674_vm3, %v5325_v3, %v828_v1  ;;  %v838_v7 = vrot.slane %v5324_v4, 4  ;;  %v841_v8 = vsel %vm674_vm3, %v5324_v4, %v840_v2 }
 0x406   : > { %v837_v9 = vperm.slane %v829_v6, %v5722_v31  ;;  %v849_v10 = vperm.slane %v841_v8, %v5722_v31 }
 0x407   : > { %v827_v11 = vsel %vm674_vm3, %v826_v5, %v5311_v62  ;;  %v839_v12 = vsel %vm674_vm3, %v838_v7, %v5310_v63 }
 0x408   : > { %v864_v38 = vrot.slane %v837_v9, 4  ;;  %v845_v13 = vperm.slane %v839_v12, %v5722_v31  ;;  %v862_v15 = vrot.slane %v849_v10, 4  ;;  %v833_v21 = vperm.slane %v827_v11, %v5722_v31 }
 0x40a   : > { %v850_v20 = vrot.slane %v845_v13, 4  ;;  %v863_v22 = vsel %vm674_vm3, %v862_v15, %v837_v9  ;;  %v865_v23 = vsel %vm674_vm3, %v849_v10, %v864_v38  ;;  %v852_v27 = vrot.slane %v833_v21, 4 }
 0x40b   : > { %v869_v18 = vperm.slane %v863_v22, %v5732_v45  ;;  %v873_v52 = vperm.slane %v865_v23, %v5732_v45 }
 0x40c   : > { %v851_v24 = vsel %vm674_vm3, %v850_v20, %v833_v21  ;;  %v853_v32 = vsel %vm674_vm3, %v845_v13, %v852_v27 }
 0x40d   : > { %v878_v25 = vrot.slane %v869_v18, 4  ;;  %v857_v26 = vperm.slane %v851_v24, %v5732_v45  ;;  %v886_v17 = vpack.c.bf16 %v869_v18, %v869_v18  ;;  %v861_v33 = vperm.slane %v853_v32, %v5732_v45 }
 0x40e   : > { %v880_v53 = vrot.slane %v873_v52, 4  ;;  %v888_v55 = vpack.c.bf16 %v873_v52, %v873_v52 }
 0x40f   : > { %v879_v19 = vsel %vm674_vm3, 0.0, %v878_v25  ;;  %v874_v28 = vrot.slane %v857_v26, 4  ;;  %v882_v30 = vpack.c.bf16 %v857_v26, %v857_v26  ;;  %v876_v34 = vrot.slane %v861_v33, 4 }
 0x410   : > { %v887_v14 = vpack.c.bf16 %v879_v19, %v879_v19  ;;  %v884_v36 = vpack.c.bf16 %v861_v33, %v861_v33  ;;  %v881_v54 = vsel %vm674_vm3, 0.0, %v880_v53 }
 0x411   : > { %v875_v29 = vsel %vm674_vm3, 0.0, %v874_v28  ;;  %v877_v35 = vsel %vm674_vm3, 0.0, %v876_v34  ;;  %v889_v56 = vpack.c.bf16 %v881_v54, %v881_v54 }
 0x412   : > { %5326 = vxpose.binary.xlu0.c.b16.start.end [1/2] (short) (narrow) %v887_v14, %v886_v17, 16  ;;  %v883_v16 = vpack.c.bf16 %v875_v29, %v875_v29  ;;  %v885_v37 = vpack.c.bf16 %v877_v35, %v877_v35 }
 0x414   : > { %5329 = vxpose.binary.xlu1.c.b16.start.end [1/2] (short) (narrow) %v883_v16, %v882_v30, 16 }
 0x422   : > { %5335 = vxpose.binary.xlu0.c.b16.start.end [1/2] (short) (narrow) %v885_v37, %v884_v36, 16 }
 0x464   : > { %v5856_v39 = vpop.f32.mrf.mxu1 }
 0x465   : > { %v1417_v44 = vsel %vm1339_vm5, %v5856_v39, -inf }
 0x46c   : > { %v1358_v40 = vpop.f32.mrf.mxu1  ;;  %v1375_v41 = vpop.f32.mrf.mxu2 }
 0x46d   : > { %v1394_v42 = vpop.f32.mrf.mxu3  ;;  %v1420_v49 = vsel %vm1339_vm5, %v1375_v41, -inf }
 0x46e   : > { %v1423_v43 = vsel %vm1339_vm5, %v1394_v42, -inf }
 0x46f   : > { %1424 = vmax.xlane.f32.xlu2 %v1423_v43 }
 0x474   : > { %v1377_v46 = vpop.f32.mrf.mxu2  ;;  %1418 = vmax.xlane.f32.xlu1 %v1417_v44  ;;  %v1413_v47 = vpop.f32.mrf.mxu1 }
 0x475   : > { %v1396_v48 = vpop.f32.mrf.mxu3  ;;  %v1426_v51 = vsel %vm1339_vm5, %v1413_v47, -inf }
 0x47c   : > { %1421 = vmax.xlane.f32.xlu1 %v1420_v49  ;;  %v1415_v50 = vpop.f32.mrf.mxu1 }
 0x484   : > { %1427 = vmax.xlane.f32.xlu1 %v1426_v51 }
 0x498   : > { %5332 = vxpose.binary.xlu2.c.b16.start.end [1/2] (short) (narrow) %v889_v56, %v888_v55, 16 }
 0x4be   : > { %v5327_v11 = vpop.trf.xlu0 }
 0x4bf   : > { %v1593_v38 = vrot.slane %v5327_v11, 4 }
 0x4c0   : > { %v5330_v57 = vpop.trf.xlu1 }
 0x4c1   : > { %v1594_v13 = vsel %vm674_vm3, %v1593_v38, %v5330_v57 }
 0x4c2   : > { %v1598_v21 = vperm.slane %v1594_v13, %v5722_v31 }
 0x4c4   : > { %v1607_v24 = vrot.slane %v1598_v21, 4 }
 0x4c6   : > { %v5328_v12 = vpop.trf.xlu0 }
 0x4c7   : > { %v1621_v22 = vrot.slane %v5328_v12, 4 }
 0x4c8   : > { %v5331_v58 = vpop.trf.xlu1 }
 0x4c9   : > { %v1622_v26 = vsel %vm674_vm3, %v1621_v22, %v5331_v58 }
 0x4ca   : > { %v1626_v28 = vperm.slane %v1622_v26, %v5722_v31 }
 0x4cc   : > { %v1635_v34 = vrot.slane %v1626_v28, 4 }
 0x4ce   : > { %v5336_v15 = vpop.trf.xlu0 }
 0x4d6   : > { %v5337_v30 = vpop.trf.xlu0 }
 0x4e2   : > { %v1425_v63 = vpop.xlane.xlu2 %1424 }
 0x4e3   : > { %v1431_v0 = vsub.f32 %v1394_v42, %v1425_v63 }
 0x4e5   : > { %v1437_v5 = vmul.f32 1.442695, %v1431_v0 }
 0x4e7   : > { %v5865_v59 = vpop.xlane.xlu1 %1418 }
 0x4ef   : > { %v1422_v60 = vpop.xlane.xlu1 %1421 }
 0x4f0   : > { %v1430_v61 = vsub.f32 %v1375_v41, %v1422_v60 }
 0x4f2   : > { %v1435_v62 = vmul.f32 1.442695, %v1430_v61 }
 0x4f4   : > { %5371 = vpow2.f32 %v1435_v62 }
 0x4f7   : > { %v1428_v1 = vpop.xlane.xlu1 %1427 }
 0x4f8   : > { %v1432_v2 = vsub.f32 %v1413_v47, %v1428_v1 }
 0x4fa   : > { %v5867_v3 = vpop.eup %5371  ;;  %v1439_v4 = vmul.f32 1.442695, %v1432_v2 }
 0x4fb   : > { %v1444_v6 = vsel %vm1339_vm5, %v5867_v3, 0.0 }
 0x4fc   : > { %5373 = vpow2.f32 %v1439_v4  ;;  %1445 = vadd.xlane.f32.xlu1 %v1444_v6 }
 0x4fd   : > { %5375 = vpow2.f32 %v1437_v5 }
 0x502   : > { %v5871_v7 = vpop.eup %5373 }
 0x503   : > { %v1450_v8 = vsel %vm1339_vm5, %v5871_v7, 0.0  ;;  %v5875_v9 = vpop.eup %5375 }
 0x504   : > { %1451 = vadd.xlane.f32.xlu1 %v1450_v8  ;;  %v1447_v10 = vsel %vm1339_vm5, %v5875_v9, 0.0 }
 0x509   : > { %1448 = vadd.xlane.f32.xlu2 %v1447_v10 }
 0x539   : > { %v5333_v20 = vpop.trf.xlu2 }
 0x53a   : > { %v1599_v23 = vrot.slane %v5333_v20, 4 }
 0x53c   : > { %v1600_v18 = vsel %vm674_vm3, %v1599_v23, %v5336_v15 }
 0x53d   : > { %v1604_v25 = vperm.slane %v1600_v18, %v5722_v31 }
 0x53f   : > { %v1605_v27 = vrot.slane %v1604_v25, 4  ;;  %v1608_v19 = vsel %vm674_vm3, %v1604_v25, %v1607_v24  ;;  %v1429_v25 = vsub.f32 %v5856_v39, %v5865_v59 }
 0x540   : > { %v1616_v14 = vperm.slane %v1608_v19, %v5732_v45 }
 0x541   : > { %v1606_v17 = vsel %vm674_vm3, %v1605_v27, %v1598_v21  ;;  %v5334_v29 = vpop.trf.xlu2  ;;  %v1433_v26 = vmul.f32 1.442695, %v1429_v25 }
 0x542   : > { %v1627_v16 = vrot.slane %v5334_v29, 4  ;;  %v5889_v32 = vperm.slane %v1606_v17, %v5732_v45  ;;  %v1619_v36 = vrot.slane %v1616_v14, 4  ;;  %v1669_v44 = vshrl.u32 %v1616_v14, 16 }
 0x544   : > { %v1628_v33 = vsel %vm674_vm3, %v1627_v16, %v5337_v30  ;;  %v1617_v41 = vrot.slane %v5889_v32, 4  ;;  %v1620_v46 = vsel %vm674_vm3, 0, %v1619_v36  ;;  %v1653_v52 = vshrl.u32 %v5889_v32, 16 }
 0x545   : > { %v1632_v35 = vperm.slane %v1628_v33, %v5722_v31  ;;  %v1677_v58 = vshrl.u32 %v1620_v46, 16 }
 0x546   : > { %v1618_v51 = vsel %vm674_vm3, 0, %v1617_v41 }
 0x547   : > { %v1633_v37 = vrot.slane %v1632_v35, 4  ;;  %v1636_v40 = vsel %vm674_vm3, %v1632_v35, %v1635_v34  ;;  %v1661_v63 = vshrl.u32 %v1618_v51, 16 }
 0x548   : > { %v1644_v42 = vperm.slane %v1636_v40, %v5732_v45 }
 0x549   : > { %v1634_v43 = vsel %vm674_vm3, %v1633_v37, %v1626_v28 }
 0x54a   : > { %v1640_v47 = vperm.slane %v1634_v43, %v5732_v45  ;;  %v1667_v48 = vpack.i.b16 %v1644_v42, %v1616_v14  ;;  %v1670_v49 = vshrl.u32 %v1644_v42, 16  ;;  %v1647_v50 = vrot.slane %v1644_v42, 4 }
 0x54c   : > { %v1671_v53 = vpack.i.b16 %v1670_v49, %v1669_v44  ;;  %v1648_v54 = vsel %vm674_vm3, 0, %v1647_v50  ;;  %v1645_v55 = vrot.slane %v1640_v47, 4  ;;  %v1651_v56 = vpack.i.b16 %v1640_v47, %v5889_v32 }
 0x54d   : > { %v1675_v57 = vpack.i.b16 %v1648_v54, %v1620_v46  ;;  %v1678_v60 = vshrl.u32 %v1648_v54, 16  ;;  %v1654_v61 = vshrl.u32 %v1640_v47, 16 }
 0x54e   : > { %5344 = vxpose.binary.xlu2.c.b16.start.end [1/2] (short) (narrow) %v1671_v53, %v1667_v48, 16  ;;  %v1646_v62 = vsel %vm674_vm3, 0, %v1645_v55 }
 0x54f   : > { %v1679_v0 = vpack.i.b16 %v1678_v60, %v1677_v58  ;;  %v1659_v1 = vpack.i.b16 %v1646_v62, %v1618_v51  ;;  %v1662_v2 = vshrl.u32 %v1646_v62, 16  ;;  %v1655_v4 = vpack.i.b16 %v1654_v61, %v1653_v52 }
 0x551   : > { %5338 = vxpose.binary.xlu0.c.b16.start.end [1/2] (short) (narrow) %v1679_v0, %v1675_v57, 16  ;;  %v1663_v5 = vpack.i.b16 %v1662_v2, %v1661_v63 }
 0x553   : > { %5341 = vxpose.binary.xlu1.c.b16.start.end [1/2] (short) (narrow) %v1663_v5, %v1659_v1, 16 }
 0x56f   : > { %v1446_v6 = vpop.xlane.xlu1 %1445 }
 0x570   : > { %5377 = vrcp.f32 %v1446_v6 }
 0x576   : > { %v5378_v8 = vpop.eup %5377 }
 0x577   : > { %v1452_v10 = vpop.xlane.xlu1 %1451  ;;  %v1458_v11 = vmul.f32 %v5378_v8, %v5867_v3 }
 0x578   : > { %5379 = vrcp.f32 %v1452_v10 }
 0x579   : > { %v1462_v12 = vpack.c.bf16 %v1458_v11, %v1458_v11 }
 0x57b   : > { %v1884_v38 = vsel %vm1339_vm5, %v1462_v12, 0 }
 0x57c   : > { %1893 = vmatpush.bf16.xpose.msrb.mxu3 %v1884_v38  ;;  %v1449_v13 = vpop.xlane.xlu2 %1448 }
 0x57d   : > { %5381 = vrcp.f32 %v1449_v13 }
 0x57e   : > { %v5380_v15 = vpop.eup %5379  ;;  %5383 = vpow2.f32 %v1433_v26 }
 0x57f   : > { %v1460_v21 = vmul.f32 %v5380_v15, %v5871_v7 }
 0x581   : > { %v1464_v20 = vpack.c.bf16 %v1460_v21, %v1460_v21 }
 0x583   : > { %v5382_v22 = vpop.eup %5381  ;;  %v1922_v23 = vsel %vm1339_vm5, %v1464_v20, 0 }
 0x584   : > { %1931 = vmatpush.bf16.xpose.msra.mxu1 %v1922_v23  ;;  %v1459_v18 = vmul.f32 %v5382_v22, %v5875_v9  ;;  %v5384_v27 = vpop.eup %5383 }
 0x585   : > { %v1441_v19 = vsel %vm1339_vm5, %v5384_v27, 0.0 }
 0x586   : > { %v1463_v24 = vpack.c.bf16 %v1459_v18, %v1459_v18 }
 0x588   : > { %v1903_v3 = vsel %vm1339_vm5, %v1463_v24, 0 }
 0x589   : > { %1912 = vmatpush.bf16.xpose.msrb.mxu0 %v1903_v3 }
 0x5c2   : > { %1442 = vadd.xlane.f32.xlu0 %v1441_v19 }
 0x5eb   : > { %5347 = vxpose.binary.xlu0.c.b16.start.end [1/2] (short) (narrow) %v1655_v4, %v1651_v56, 16 }
 0x5ef   : > { %v5345_v39 = vpop.trf.xlu2 }
 0x5f0   : > { %v1809_v33 = vrot.slane %v5345_v39, 4 }
 0x5f7   : > { %v5346_v43 = vpop.trf.xlu2 }
 0x5f8   : > { %v1829_v47 = vrot.slane %v5346_v43, 4 }
 0x5fd   : > { %v5339_v7 = vpop.trf.xlu0 }
 0x5fe   : > { %v1815_v32 = vrot.slane %v5339_v7, 4 }
 0x5ff   : > { %v5342_v16 = vpop.trf.xlu1 }
 0x600   : > { %v1816_v59 = vsel %vm674_vm3, %v1815_v32, %v5342_v16 }
 0x601   : > { %v1820_v34 = vperm.slane %v1816_v59, %v5722_v31 }
 0x603   : > { %v1821_v41 = vrot.slane %v1820_v34, 4 }
 0x605   : > { %v5340_v28 = vpop.trf.xlu0 }
 0x606   : > { %v1835_v35 = vrot.slane %v5340_v28, 4 }
 0x607   : > { %v5343_v36 = vpop.trf.xlu1 }
 0x608   : > { %v1836_v44 = vsel %vm674_vm3, %v1835_v35, %v5343_v36 }
 0x609   : > { %v1840_v48 = vperm.slane %v1836_v44, %v5722_v31 }
 0x60b   : > { %v1841_v52 = vrot.slane %v1840_v48, 4 }
 0x635   : > { %v1443_v17 = vpop.xlane.xlu0 %1442 }
 0x636   : > { %5385 = vrcp.f32 %v1443_v17 }
 0x63c   : > { %v5386_v14 = vpop.eup %5385 }
 0x63d   : > { %v1457_v9 = vmul.f32 %v5386_v14, %v5384_v27 }
 0x63f   : > { %v1461_v29 = vpack.c.bf16 %v1457_v9, %v1457_v9 }
 0x641   : > { %v1865_v30 = vsel %vm1339_vm5, %v1461_v29, 0 }
 0x642   : > { %1874 = vmatpush.bf16.xpose.msrb.mxu2 %v1865_v30 }
 0x697   : > { %v5348_v37 = vpop.trf.xlu0 }
 0x698   : > { %v1810_v40 = vsel %vm674_vm3, %v1809_v33, %v5348_v37 }
 0x699   : > { %v1814_v42 = vperm.slane %v1810_v40, %v5722_v31 }
 0x69b   : > { %v1822_v46 = vsel %vm674_vm3, %v1821_v41, %v1814_v42 }
 0x69c   : > { %v1826_v49 = vperm.slane %v1822_v46, %v5732_v45 }
 0x69e   : > { %v1827_v54 = vrot.slane %v1826_v49, 4  ;;  %v1852_v57 = vshrl.u32 %v1826_v49, 16 }
 0x69f   : > { %v5349_v50 = vpop.trf.xlu0 }
 0x6a0   : > { %v1830_v51 = vsel %vm674_vm3, %v1829_v47, %v5349_v50  ;;  %v1828_v61 = vsel %vm674_vm3, 0, %v1827_v54 }
 0x6a1   : > { %v1834_v53 = vperm.slane %v1830_v51, %v5722_v31  ;;  %v1858_v2 = vshrl.u32 %v1828_v61, 16 }
 0x6a3   : > { %v1842_v55 = vsel %vm674_vm3, %v1841_v52, %v1834_v53 }
 0x6a4   : > { %v1846_v56 = vperm.slane %v1842_v55, %v5732_v45 }
 0x6a6   : > { %v1851_v58 = vpack.i.b16 %v1846_v56, %v1826_v49  ;;  %v1853_v60 = vshrl.u32 %v1846_v56, 16  ;;  %v1847_v62 = vrot.slane %v1846_v56, 4 }
 0x6a8   : > { %4343 = vmatmul.msk.bf16.vlgmr.msrb.gmra.mxu2 %vm1339_vm5, %v1851_v58  ;;  %v1854_v63 = vpack.i.b16 %v1853_v60, %v1852_v57  ;;  %v1848_v0 = vsel %vm674_vm3, 0, %v1847_v62 }
 0x6a9   : > { %v1857_v1 = vpack.i.b16 %v1848_v0, %v1828_v61  ;;  %v1859_v4 = vshrl.u32 %v1848_v0, 16 }
 0x6aa   : > { %4344 = vmatmul.msk.bf16.vlgmr.msrb.gmra.mxu3 %vm1339_vm5, %v1854_v63 }
 0x6ab   : > { %v1860_v5 = vpack.i.b16 %v1859_v4, %v1858_v2  ;;  %4345 = vmatmul.msk.bf16.vlgmr.msrb.gmra.mxu0 %vm1339_vm5, %v1857_v1 }
 0x6ad   : > { %4346 = vmatmul.msk.bf16.vlgmr.msra.gmra.mxu1 %vm1339_vm5, %v1860_v5 }
 0x728   : > { %v1914_v6 = vpop.f32.mrf.mxu0 }
 0x72a   : > { %v1933_v8 = vpop.f32.mrf.mxu1 }
 0x72b   : > { %v1876_v10 = vpop.f32.mrf.mxu2 }
 0x72c   : > { %v5350_v11 = vpack.i.bf16 %v1876_v10, %v1914_v6 }
 0x72d   : > { %v1895_v12 = vpop.f32.mrf.mxu3 }
 0x72e   : > { %v5357_v38 = vpack.i.bf16 %v1895_v12, %v1933_v8  ;;  %5351 = vxpose.xlu0.b32.start.end [1/1] (short) (narrow) %v5350_v11, 8 }
 0x730   : > { %v1916_v13 = vpop.f32.mrf.mxu0  ;;  %5358 = vxpose.xlu1.b32.start.end [1/1] (short) (narrow) %v5357_v38, 8 }
 0x732   : > { %v1935_v15 = vpop.f32.mrf.mxu1 }
 0x733   : > { %v1878_v21 = vpop.f32.mrf.mxu2 }
 0x735   : > { %v1897_v20 = vpop.f32.mrf.mxu3 }
 0x7d2   : > { %v5352_v22 = vpop.trf.xlu0 }
 0x7d3   : > { %v5356_v23 = vunpack.i.h.bf16 %v5352_v22  ;;  %v5353_v18 = vunpack.i.l.bf16 %v5352_v22 }
 0x7d4   : > { %v5359_v24 = vpop.trf.xlu1 }
 0x7d5   : > { %v2067_v3 = vrot.slane %v5356_v23, 4  ;;  %v2065_v25 = vrot.slane %v5353_v18, 4  ;;  %v5363_v26 = vunpack.i.h.bf16 %v5359_v24  ;;  %v5360_v27 = vunpack.i.l.bf16 %v5359_v24 }
 0x7d7   : > { %v2066_v19 = vsel %vm674_vm3, %v2065_v25, %v5356_v23  ;;  %v2068_v7 = vsel %vm674_vm3, %v5353_v18, %v2067_v3  ;;  %v2079_v28 = vrot.slane %v5363_v26, 4  ;;  %v2077_v9 = vrot.slane %v5360_v27, 4  ;;  %v5032_v25 = vld [vmem:[%s6370_s13 + $0x8] sm:$0xff] }
 0x7d8   : > { %v2072_v17 = vperm.slane %v2066_v19, %v5722_v31  ;;  %v2076_v14 = vperm.slane %v2068_v7, %v5722_v31  ;;  %2222 = vmatpush.bf16.msra.mxu2 %v5032_v25  ;;  %v5052_v25 = vld [vmem:[%s5664_s30 + $0x9c] sm:$0xf] }
 0x7d9   : > { %v2080_v29 = vsel %vm674_vm3, %v5360_v27, %v2079_v28  ;;  %v2078_v32 = vsel %vm674_vm3, %v2077_v9, %v5363_v26  ;;  %v5365_v9 = vld [vmem:[%s5685_s21 + $0x1] ss:$0 sm:$0xff] }
 0x7da   : > { %v2091_v30 = vrot.slane %v2072_v17, 4  ;;  %v2103_v16 = vrot.slane %v2076_v14, 4  ;;  %v2088_v39 = vperm.slane %v2080_v29, %v5722_v31  ;;  %v2084_v59 = vperm.slane %v2078_v32, %v5722_v31 }
 0x7dc   : > { %v2101_v33 = vrot.slane %v2088_v39, 4  ;;  %v2104_v34 = vsel %vm674_vm3, %v2088_v39, %v2103_v16  ;;  %v2089_v35 = vrot.slane %v2084_v59, 4  ;;  %v2092_v36 = vsel %vm674_vm3, %v2084_v59, %v2091_v30  ;;  %v5393_v16 = vld [vmem:[#allocation2] sm:$0xff] }
 0x7dd   : > { %v2112_v37 = vperm.slane %v2104_v34, %v5732_v45  ;;  %v2100_v40 = vperm.slane %v2092_v36, %v5732_v45 }
 0x7de   : > { %v2102_v41 = vsel %vm674_vm3, %v2101_v33, %v2076_v14  ;;  %v2090_v42 = vsel %vm674_vm3, %v2089_v35, %v2072_v17  ;;  %v5505_v35 = vmov 32.0  }
 0x7df   : > { %v2108_v43 = vperm.slane %v2102_v41, %v5732_v45  ;;  %v2119_v44 = vrot.slane %v2112_v37, 4  ;;  %v2096_v46 = vperm.slane %v2090_v42, %v5732_v45  ;;  %v2115_v47 = vrot.slane %v2100_v40, 4 }
 0x7e0   : > { %5387 = vrcp.f32 %v5505_v35 }
 0x7e1   : > { %v2117_v48 = vrot.slane %v2108_v43, 4  ;;  %v2120_v49 = vsel %vm674_vm3, 0.0, %v2119_v44  ;;  %v2132_v50 = vsel %vm674_vm3, %v2119_v44, %v2108_v43  ;;  %v2116_v51 = vsel %vm674_vm3, 0.0, %v2115_v47  ;;  %v4422_v43 = vld [vmem:[%s5664_s30 + $0x80] sm:$0xf] }
 0x7e2   : > { %v2113_v52 = vrot.slane %v2096_v46, 4  ;;  %v2121_v53 = vsel %vm674_vm3, %v2115_v47, %v2096_v46  ;;  %v2136_v54 = vperm.slane %v2132_v50, %v5722_v31  ;;  %v2126_v57 = vrot.slane %v2116_v51, 4  ;;  %v5057_v44 = vld [vmem:[%s5664_s30 + $0xbc] sm:$0xf0]  ;;  %v5049_v46 = vld [vmem:[%s5664_s30 + $0x84] sm:$0xf] }
 0x7e3   : > { %v2118_v55 = vsel %vm674_vm3, 0.0, %v2117_v48  ;;  %v2125_v56 = vperm.slane %v2121_v53, %v5722_v31  ;;  %v2137_v58 = vrot.slane %v2120_v49, 4  ;;  %v4423_v47 = vor.u32 %v5057_v44, %v4422_v43  ;;  %v4424_v48 = vld [vmem:[%s5664_s30 + $0xc0] sm:$0xf0]  ;;  %v4430_v49 = vld [vmem:[%s5664_s30 + $0x88] sm:$0xf] }
 0x7e4   : > { %v2114_v60 = vsel %vm674_vm3, 0.0, %v2113_v52  ;;  %v2157_v61 = vrot.slane %v2136_v54, 4  ;;  %v5058_v50 = vld [vmem:[%s5664_s30 + $0xc4] sm:$0xf0]  ;;  %v4427_v51 = vor.u32 %v5049_v46, %v4424_v48  ;;  %v5050_v53 = vld [vmem:[%s5664_s30 + $0x8c] sm:$0xf] }
 0x7e5   : > { %v2127_v62 = vsel %vm674_vm3, %v2126_v57, %v2114_v60  ;;  %v2138_v63 = vsel %vm674_vm3, %v2137_v58, %v2118_v55  ;;  %v2145_v0 = vrot.slane %v2125_v56, 4  ;;  %v4431_v52 = vor.u32 %v5058_v50, %v4430_v49  ;;  %2510 = vmatpush.bf16.msra.mxu3 %v4423_v47  ;;  %v4358_v57 = vld [vmem:[%s5664_s30] sm:$0xf]  ;;  %v5033_v60 = vld [vmem:[%s5664_s30 + $0x4] sm:$0xf] }
 0x7e6   : > { %v2131_v1 = vperm.slane %v2127_v62, %v5722_v31  ;;  %v2142_v2 = vperm.slane %v2138_v63, %v5722_v31  ;;  %v5388_v36 = vpop.eup %5387  ;;  %2523 = vmatpush.bf16.msra.mxu0 %v4427_v51  ;;  %v5041_v58 = vld [vmem:[%s5664_s30 + $0x3c] sm:$0xf0]  ;;  %v4360_v63 = vld [vmem:[%s5664_s30 + $0x40] sm:$0xf0]  ;;  %v5366_v44 = vld [vmem:[%s5685_s21 + $0x13] ss:$0 sm:$0xff] }
 0x7e7   : > { %v2236_v37 = vmul.f32 32.0, %v5388_v36  ;;  %vm2240_vm8 = vweird.f32 %v5388_v36  ;;  %2536 = vmatpush.bf16.msrb.mxu1 %v4431_v52  ;;  %v4359_v62 = vor.u32 %v5041_v58, %v4358_v57  ;;  %v5367_v47 = vld [vmem:[%s5685_s21 + $0x14] ss:$0 sm:$0xff]  ;;  %v4454_v50 = vld [vmem:[%s5664_s30 + $0xa0] sm:$0xf] }
 0x7e8   : > { %v2146_v4 = vsel %vm674_vm3, %v2131_v1, %v2145_v0  ;;  %v2158_v5 = vsel %vm674_vm3, %v2142_v2, %v2157_v61  ;;  %v2143_v6 = vrot.slane %v2131_v1, 4  ;;  %v2155_v8 = vrot.slane %v2142_v2, 4  ;;  %v4366_v0 = vld [vmem:[%s5664_s30 + $0x8] sm:$0xf]  ;;  %v5061_v51 = vld [vmem:[%s5664_s30 + $0xdc] sm:$0xf0] }
 0x7e9   : > { %v2154_v10 = vperm.slane %v2146_v4, %v5732_v45  ;;  %v2166_v11 = vperm.slane %v2158_v5, %v5732_v45  ;;  %v2237_v40 = vsub.f32 1.0, %v2236_v37  ;;  %v5042_v1 = vld [vmem:[%s5664_s30 + $0x44] sm:$0xf0]  ;;  %v4363_v4 = vor.u32 %v5033_v60, %v4360_v63  ;;  %2511 = vmatpush.bf16.msra.mxu3 %v4359_v62  ;;  %v5053_v52 = vld [vmem:[%s5664_s30 + $0xa4] sm:$0xf] }
 0x7ea   : > { %v2144_v12 = vsel %vm674_vm3, %v2143_v6, %v2125_v56  ;;  %v2156_v38 = vsel %vm674_vm3, %v2155_v8, %v2136_v54  ;;  %v4432_v54 = vld [vmem:[%s5664_s30 + $0xc8] sm:$0xf0]  ;;  %v4367_v5 = vor.u32 %v5042_v1, %v4366_v0  ;;  %v4390_v63 = vld [vmem:[%s5664_s30 + $0x20] sm:$0xf] }
 0x7eb   : > { %v2173_v13 = vrot.slane %v2154_v10, 4  ;;  %v2171_v15 = vrot.slane %v2166_v11, 4  ;;  %v2150_v21 = vperm.slane %v2144_v12, %v5732_v45  ;;  %v2162_v31 = vperm.slane %v2156_v38, %v5732_v45  ;;  %v5031_v45 = vld [vmem:[%s6370_s13] sm:$0xff]  ;;  %v5034_v6 = vld [vmem:[%s5664_s30 + $0xc] sm:$0xf]  ;;  %2524 = vmatpush.bf16.msra.mxu0 %v4363_v4 }
 0x7ec   : > { %2223 = vmatpush.bf16.msra.mxu2 %v5031_v45  ;;  %v2238_v41 = vmul.f32 %v5388_v36, %v2237_v40  ;;  %v4435_v56 = vor.u32 %v5050_v53, %v4432_v54  ;;  %v4368_v8 = vld [vmem:[%s5664_s30 + $0x48] sm:$0xf0]  ;;  %2537 = vmatpush.bf16.msrb.mxu1 %v4367_v5  ;;  %v4448_v45 = vld [vmem:[%s5664_s30 + $0xd8] sm:$0xf0]  ;;  %v4456_v53 = vld [vmem:[%s5664_s30 + $0xe0] sm:$0xf0] }
 0x7ed   : > { %v2174_v20 = vsel %vm674_vm3, %v2166_v11, %v2173_v13  ;;  %v2172_v22 = vsel %vm674_vm3, %v2171_v15, %v2154_v10  ;;  %v2167_v23 = vrot.slane %v2162_v31, 4  ;;  %v2169_v18 = vrot.slane %v2150_v21, 4  ;;  %v4438_v15 = vld [vmem:[%s5664_s30 + $0x90] sm:$0xf]  ;;  %v4462_v54 = vld [vmem:[%s5664_s30 + $0xa8] sm:$0xf] }
 0x7ee   : > { %2184 = vrot.lane.b32.xlu1 %v2174_v20, %s5502_s19  ;;  %2180 = vrot.lane.b32.xlu0 %v2172_v22, %s5503_s24  ;;  %v2239_v42 = vadd.f32 %v5388_v36, %v2238_v41  ;;  %v4371_v11 = vor.u32 %v5034_v6, %v4368_v8  ;;  %v5054_v57 = vld [vmem:[%s5664_s30 + $0xac] sm:$0xf]  ;;  %v4459_v62 = vor.u32 %v5053_v52, %v4456_v53  ;;  %v5045_v0 = vld [vmem:[%s5664_s30 + $0x5c] sm:$0xf0] }
 0x7ef   : > { %v2170_v24 = vsel %vm674_vm3, %v2162_v31, %v2169_v18  ;;  %v2168_v3 = vsel %vm674_vm3, %v2167_v23, %v2150_v21  ;;  %v5059_v21 = vld [vmem:[%s5664_s30 + $0xcc] sm:$0xf0]  ;;  %v5051_v31 = vld [vmem:[%s5664_s30 + $0x94] sm:$0xf]  ;;  %v4446_v18 = vld [vmem:[%s5664_s30 + $0x98] sm:$0xf] }
 0x7f0   : > { %2176 = vrot.lane.b32.xlu2 %v2170_v24, %s5504_s17  ;;  %v5992_v55 = vsel %vm2240_vm8, %v5388_v36, %v2239_v42  ;;  %2549 = vmatpush.bf16.msrb.mxu2 %v4435_v56  ;;  %v4439_v22 = vor.u32 %v5059_v21, %v4438_v15  ;;  %v4440_v23 = vld [vmem:[%s5664_s30 + $0xd0] sm:$0xf0]  ;;  %v4464_v58 = vld [vmem:[%s5664_s30 + $0xe8] sm:$0xf0]  ;;  %v5037_v4 = vld [vmem:[%s5664_s30 + $0x24] sm:$0xf] }
 0x7f1   : > { %v4443_v24 = vor.u32 %v5051_v31, %v4440_v23  ;;  %v4392_v5 = vld [vmem:[%s5664_s30 + $0x60] sm:$0xf0]  ;;  %v4398_v6 = vld [vmem:[%s5664_s30 + $0x28] sm:$0xf]  ;;  %v4470_v21 = vld [vmem:[%s5664_s30 + $0xb0] sm:$0xf] }
 0x7f2   : > { %2562 = vmatpush.bf16.msrb.mxu3 %v4439_v22  ;;  %v5046_v8 = vld [vmem:[%s5664_s30 + $0x64] sm:$0xf0]  ;;  %v5063_v31 = vld [vmem:[%s5664_s30 + $0xec] sm:$0xf0]  ;;  %v4472_v22 = vld [vmem:[%s5664_s30 + $0xf0] sm:$0xf0] }
 0x7f3   : > { %2575 = vmatpush.bf16.msrb.mxu0 %v4443_v24  ;;  %v4478_v23 = vld [vmem:[%s5664_s30 + $0xb8] sm:$0xf]  ;;  %v5056_v24 = vld [vmem:[%s5664_s30 + $0xbc] sm:$0xf]  ;;  %v5093_v52 = vld [vmem:[%s5669_s25 + $0xe0] sm:$0xff] }
 0x7f4   : > { %2550 = vmatpush.bf16.msrb.mxu2 %v4371_v11  ;;  %v4400_v11 = vld [vmem:[%s5664_s30 + $0x68] sm:$0xf0]  ;;  %v5076_v53 = vld [vmem:[%s5669_s25 + $0x58] sm:$0xff] }
 0x84a   : > { %v2177_v26 = vpop.permute.xlu2 %2176 }
 0x84b   : > { %v2187_v27 = vsel %vm1339_vm5, %v2168_v3, %v2177_v26  ;;  %v5060_v3 = vld [vmem:[%s5664_s30 + $0xd4] sm:$0xf0] }
 0x860   : > { %v2185_v19 = vpop.permute.xlu1 %2184  ;;  %v2181_v7 = vpop.permute.xlu0 %2180 }
 0x861   : > { %v2189_v28 = vsel %vm2188_vm6, %v2187_v27, %v2181_v7  ;;  %v4447_v27 = vor.u32 %v5060_v3, %v4446_v18  ;;  %v4374_v7 = vld [vmem:[%s5664_s30 + $0x10] sm:$0xf]  ;;  %v5064_v18 = vld [vmem:[%s5664_s30 + $0xf4] sm:$0xf0]  ;;  %v4480_v3 = vld [vmem:[%s5664_s30 + $0xf8] sm:$0xf0] }
 0x862   : > { %v2191_v17 = vsel %vm2190_vm7, %v2189_v28, %v2185_v19  ;;  %v4451_v19 = vor.u32 %v5052_v25, %v4448_v45  ;;  %v5043_v28 = vld [vmem:[%s5664_s30 + $0x4c] sm:$0xf0]  ;;  %v4471_v25 = vor.u32 %v5063_v31, %v4470_v21 }
 0x863   : > { %v2192_v14 = vpack.c.bf16 %v2191_v17, %v2191_v17  ;;  %v4375_v17 = vor.u32 %v5043_v28, %v4374_v7  ;;  %2588 = vmatpush.bf16.msra.mxu1 %v4447_v27  ;;  %v5047_v27 = vld [vmem:[%s5664_s30 + $0x6c] sm:$0xf0]  ;;  %v4483_v7 = vor.u32 %v5056_v24, %v4480_v3  ;;  %v5039_v28 = vld [vmem:[%s5664_s30 + $0x34] sm:$0xf]  ;;  %v5109_v24 = vld [vmem:[%s5669_s25 + $0x160] sm:$0xff] }
 0x864   : > { %v5103_v21 = vld [vmem:[%s5669_s25 + $0x130] sm:$0xff]  ;;  %v5117_v3 = vld [vmem:[%s5669_s25 + $0x1a0] sm:$0xff] }
 0x865   : > { %4355 = vmatmul.msk.bf16.vlgmr.msra.gmra.mxu2 %vm646_vm2, %v2192_v14  ;;  %v5035_v14 = vld [vmem:[%s5664_s30 + $0x14] sm:$0xf]  ;;  %2563 = vmatpush.bf16.msrb.mxu3 %v4375_v17 }
 0x866   : > { %2601 = vmatpush.bf16.msra.mxu2 %v4451_v19  ;;  %v4479_v19 = vor.u32 %v5064_v18, %v4478_v23  ;;  %v4408_v17 = vld [vmem:[%s5664_s30 + $0x70] sm:$0xf0]  ;;  %v5102_v23 = vld [vmem:[%s5669_s25 + $0x128] sm:$0xff] }
 0x867   : > { %v5127_v31 = vld [vmem:[%s5669_s25 + $0x1f0] sm:$0xff]  ;;  %v5126_v18 = vld [vmem:[%s5669_s25 + $0x1e8] sm:$0xff] }
 0x8e8   : > { %v2225_v29 = vpop.f32.mrf.mxu2 }
 0x8e9   : > { %v2226_v30 = vadd.f32 %v5365_v9, %v2225_v29  ;;  %v4376_v9 = vld [vmem:[%s5664_s30 + $0x50] sm:$0xf0]  ;;  %v4382_v29 = vld [vmem:[%s5664_s30 + $0x18] sm:$0xf] }
 0x8eb   : > { %v5977_v32 = vadd.f32 %v5393_v16, %v2226_v30  ;;  %v4379_v30 = vor.u32 %v5035_v14, %v4376_v9  ;;  %v5044_v16 = vld [vmem:[%s5664_s30 + $0x54] sm:$0xf0] }
 0x8ec   : > { %v4414_v14 = vld [vmem:[%s5664_s30 + $0x38] sm:$0xf] }
 0x8ed   : > { %v2232_v39 = vsel %vm646_vm2, %v5977_v32, 0.0  ;;  %v2243_v59 = vmul.f32 %v5977_v32, %v5977_v32  ;;  %2576 = vmatpush.bf16.msrb.mxu0 %v4379_v30  ;;  %v5048_v9 = vld [vmem:[%s5664_s30 + $0x74] sm:$0xf0]  ;;  %v4416_v30 = vld [vmem:[%s5664_s30 + $0x78] sm:$0xf0] }
 0x8ee   : > { %2233 = vadd.xlane.f32.xlu1 %v2232_v39  ;;  %v5036_v39 = vld [vmem:[%s5664_s30 + $0x1c] sm:$0xf] }
 0x8ef   : > { %v2244_v33 = vsel %vm646_vm2, %v2243_v59, 0.0  ;;  %v4384_v59 = vld [vmem:[%s5664_s30 + $0x58] sm:$0xf0] }
 0x8f0   : > { %v2227_v34 = vpop.f32.mrf.mxu2  ;;  %2245 = vadd.xlane.f32.xlu2 %v2244_v33  ;;  %v4383_v33 = vor.u32 %v5044_v16, %v4382_v29  ;;  %v5040_v29 = vld [vmem:[%s5664_s30 + $0x3c] sm:$0xf] }
 0x8f1   : > { %v4387_v34 = vor.u32 %v5036_v39, %v4384_v59  ;;  %v4411_v39 = vor.u32 %v5039_v28, %v4408_v17  ;;  %v4415_v59 = vor.u32 %v5048_v9, %v4414_v14  ;;  %v5100_v28 = vld [vmem:[%s5669_s25 + $0x118] sm:$0xff]  ;;  %v5106_v14 = vld [vmem:[%s5669_s25 + $0x148] sm:$0xff] }
 0x8f2   : > { %2589 = vmatpush.bf16.msra.mxu1 %v4383_v33  ;;  %v4419_v33 = vor.u32 %v5040_v29, %v4416_v30  ;;  %v5124_v17 = vld [vmem:[%s5669_s25 + $0x1d8] sm:$0xff]  ;;  %v5114_v9 = vld [vmem:[%s5669_s25 + $0x188] sm:$0xff]  ;;  %v5099_v29 = vld [vmem:[%s5669_s25 + $0x110] sm:$0xff] }
 0x8f3   : > { %2602 = vmatpush.bf16.msra.mxu2 %v4387_v34  ;;  %v5080_v34 = vld [vmem:[%s5669_s25 + $0x78] sm:$0xff]  ;;  %v5123_v30 = vld [vmem:[%s5669_s25 + $0x1d0] sm:$0xff] }
 0x961   : > { %v2234_v61 = vpop.xlane.xlu1 %2233 }
 0x962   : > { %v6001_v2 = vmul.f32 %v5992_v55, %v2234_v61  ;;  %v4455_v61 = vor.u32 %v5061_v51, %v4454_v50  ;;  %v5085_v50 = vld [vmem:[%s5669_s25 + $0xa0] sm:$0xff] }
 0x963   : > { %v2246_v10 = vpop.xlane.xlu2 %2245  ;;  %v5069_v51 = vld [vmem:[%s5669_s25 + $0x20] sm:$0xff] }
 0x964   : > { %v2248_v12 = vmul.f32 %v6001_v2, %v6001_v2  ;;  %v2247_v38 = vmul.f32 %v2246_v10, %v5992_v55  ;;  %v2251_v43 = vsub.f32 %v5977_v32, %v6001_v2  ;;  %v5062_v32 = vld [vmem:[%s5664_s30 + $0xe4] sm:$0xf0]  ;;  %v4467_v2 = vor.u32 %v5054_v57, %v4464_v58  ;;  %v5038_v10 = vld [vmem:[%s5664_s30 + $0x2c] sm:$0xf]  ;;  %v5092_v57 = vld [vmem:[%s5669_s25 + $0xd8] sm:$0xff] }
 0x965   : > { %v4463_v1 = vor.u32 %v5062_v32, %v4462_v54  ;;  %v4403_v15 = vor.u32 %v5038_v10, %v4400_v11  ;;  %v5084_v54 = vld [vmem:[%s5669_s25 + $0x98] sm:$0xff]  ;;  %v5075_v58 = vld [vmem:[%s5669_s25 + $0x50] sm:$0xff]  ;;  %v5065_v10 = vld [vmem:[%s5669_s25] sm:$0xff] }
 0x966   : > { %v2249_v13 = vsub.f32 %v2247_v38, %v2248_v12  ;;  %v4391_v12 = vor.u32 %v5045_v0, %v4390_v63  ;;  %v4395_v38 = vor.u32 %v5037_v4, %v4392_v5  ;;  %v5068_v32 = vld [vmem:[%s5669_s25 + $0x18] sm:$0xff]  ;;  %v5091_v63 = vld [vmem:[%s5669_s25 + $0xd0] sm:$0xff]  ;;  %v5074_v0 = vld [vmem:[%s5669_s25 + $0x48] sm:$0xff] }
 0x967   : > { %v5073_v4 = vld [vmem:[%s5669_s25 + $0x40] sm:$0xff] }
 0x968   : > { %v2250_v20 = vmax.f32 %v2249_v13, 0.0  ;;  %v4399_v13 = vor.u32 %v5046_v8, %v4398_v6  ;;  %v5081_v5 = vld [vmem:[%s5669_s25 + $0x80] sm:$0xff]  ;;  %v5112_v6 = vld [vmem:[%s5669_s25 + $0x178] sm:$0xff] }
 0x969   : > { %v5120_v8 = vld [vmem:[%s5669_s25 + $0x1b8] sm:$0xff]  ;;  %v5089_v11 = vld [vmem:[%s5669_s25 + $0xc0] sm:$0xff] }
 0x96a   : > { %v2252_v26 = vadd.f32 1e-05, %v2250_v20  ;;  %v5055_v20 = vld [vmem:[%s5664_s30 + $0xb4] sm:$0xf] }
 0x96b   : > { %v4475_v45 = vor.u32 %v5055_v20, %v4472_v22  ;;  %v5110_v20 = vld [vmem:[%s5669_s25 + $0x168] sm:$0xff] }
 0x96c   : > { %5389 = vrsqrt.f32 %v2252_v26  ;;  %vm2259_vm10 = vweird.f32 %v2252_v26  ;;  %v5118_v22 = vld [vmem:[%s5669_s25 + $0x1a8] sm:$0xff] }
 0x972   : > { %v5390_v35 = vpop.eup %5389 }
 0x973   : > { %v2254_v36 = vmul.f32 %v5390_v35, %v2252_v26  ;;  %vm2260_vm9 = vweird.f32 %v5390_v35  ;;  %v4406_v26 = vld [vmem:[%s5664_s30 + $0x30] sm:$0xf] }
 0x974   : > { %vm2261_vm11 = vmor %vm2259_vm10, %vm2260_vm9  ;;  %v4407_v16 = vor.u32 %v5047_v27, %v4406_v26  ;;  %v5108_v26 = vld [vmem:[%s5669_s25 + $0x158] sm:$0xff] }
 0x975   : > { %v2255_v37 = vmul.f32 %v5390_v35, %v2254_v36  ;;  %v5072_v36 = vld [vmem:[%s5669_s25 + $0x38] sm:$0xff] }
 0x976   : > { %v5116_v27 = vld [vmem:[%s5669_s25 + $0x198] sm:$0xff] }
 0x977   : > { %v2256_v40 = vmul.f32 0.5, %v2255_v37  ;;  %v5096_v37 = vld [vmem:[%s5669_s25 + $0xf8] sm:$0xff] }
 0x979   : > { %v2257_v41 = vsub.f32 1.5, %v2256_v40  ;;  %v5079_v40 = vld [vmem:[%s5669_s25 + $0x70] sm:$0xff] }
 0x97b   : > { %v2258_v42 = vmul.f32 %v5390_v35, %v2257_v41  ;;  %v5087_v41 = vld [vmem:[%s5669_s25 + $0xb0] sm:$0xff] }
 0x97d   : > { %v2262_v46 = vsel %vm2261_vm11, %v5390_v35, %v2258_v42  ;;  %v5088_v35 = vld [vmem:[%s5669_s25 + $0xb8] sm:$0xff]  ;;  %v5071_v42 = vld [vmem:[%s5669_s25 + $0x30] sm:$0xff] }
 0x97e   : > { %v2263_v48 = vmul.f32 %v2262_v46, %v2251_v43  ;;  %v5095_v43 = vld [vmem:[%s5669_s25 + $0xf0] sm:$0xff]  ;;  %v5086_v46 = vld [vmem:[%s5669_s25 + $0xa8] sm:$0xff] }
 0x980   : > { %v2267_v49 = vmul.f32 %v5366_v44, %v2263_v48  ;;  %v5078_v44 = vld [vmem:[%s5669_s25 + $0x68] sm:$0xff] }
 0x981   : > { %v5094_v48 = vld [vmem:[%s5669_s25 + $0xe8] sm:$0xff] }
 0x982   : > { %v6033_v56 = vadd.f32 %v5367_v47, %v2267_v49  ;;  %v5070_v47 = vld [vmem:[%s5669_s25 + $0x28] sm:$0xff]  ;;  %v5077_v49 = vld [vmem:[%s5669_s25 + $0x60] sm:$0xff] }
 0x984   : > { %v6040_v60 = vpack.c.bf16 %v6033_v56, %v6033_v56 }
 0x986   : > { %4484 = vmatmul.msk.bf16.vlgmr.msra.gmra.mxu3 %vm646_vm2, %v6040_v60  ;;  %4485 = vmatmul.msk.bf16.vlgmr.msra.gmra.mxu0 %vm646_vm2, %v6040_v60 }
 0x987   : > { %4486 = vmatmul.msk.bf16.vlgmr.msrb.gmra.mxu1 %vm646_vm2, %v6040_v60  ;;  %4487 = vmatmul.msk.bf16.vlgmr.msrb.gmra.mxu2 %vm646_vm2, %v6040_v60 }
 0x988   : > { %2614 = vmatpush.bf16.msra.mxu3 %v4455_v61  ;;  %2627 = vmatpush.bf16.msra.mxu0 %v4459_v62  ;;  %v5083_v61 = vld [vmem:[%s5669_s25 + $0x90] sm:$0xff] }
 0x989   : > { %2640 = vmatpush.bf16.msrb.mxu1 %v4463_v1  ;;  %2653 = vmatpush.bf16.msrb.mxu2 %v4467_v2  ;;  %v5067_v62 = vld [vmem:[%s5669_s25 + $0x10] sm:$0xff]  ;;  %v5066_v1 = vld [vmem:[%s5669_s25 + $0x8] sm:$0xff] }
 0x98a   : > { %v5090_v2 = vld [vmem:[%s5669_s25 + $0xc8] sm:$0xff] }
 0x98c   : > { %2615 = vmatpush.bf16.msra.mxu3 %v4391_v12  ;;  %2628 = vmatpush.bf16.msra.mxu0 %v4395_v38  ;;  %v5104_v12 = vld [vmem:[%s5669_s25 + $0x138] sm:$0xff] }
 0x98d   : > { %2641 = vmatpush.bf16.msrb.mxu1 %v4399_v13  ;;  %2654 = vmatpush.bf16.msrb.mxu2 %v4403_v15  ;;  %v5128_v38 = vld [vmem:[%s5669_s25 + $0x1f8] sm:$0xff]  ;;  %v5111_v13 = vld [vmem:[%s5669_s25 + $0x170] sm:$0xff] }
 0x98e   : > { %v5119_v15 = vld [vmem:[%s5669_s25 + $0x1b0] sm:$0xff] }
 0x996   : > { %4488 = vmatmul.msk.bf16.vlgmr.msrb.gmra.mxu3 %vm646_vm2, %v6040_v60  ;;  %4489 = vmatmul.msk.bf16.vlgmr.msrb.gmra.mxu0 %vm646_vm2, %v6040_v60 }
 0x997   : > { %4490 = vmatmul.msk.bf16.vlgmr.msra.gmra.mxu1 %vm646_vm2, %v6040_v60  ;;  %4491 = vmatmul.msk.bf16.vlgmr.msra.gmra.mxu2 %vm646_vm2, %v6040_v60 }
 0x998   : > { %2666 = vmatpush.bf16.msrb.mxu3 %v4471_v25  ;;  %2679 = vmatpush.bf16.msrb.mxu0 %v4475_v45  ;;  %v5101_v25 = vld [vmem:[%s5669_s25 + $0x120] sm:$0xff] }
 0x999   : > { %2692 = vmatpush.bf16.msra.mxu1 %v4479_v19  ;;  %2705 = vmatpush.bf16.msra.mxu2 %v4483_v7  ;;  %v5125_v45 = vld [vmem:[%s5669_s25 + $0x1e0] sm:$0xff]  ;;  %v5107_v19 = vld [vmem:[%s5669_s25 + $0x150] sm:$0xff] }
 0x99a   : > { %v5115_v7 = vld [vmem:[%s5669_s25 + $0x190] sm:$0xff] }
 0x99c   : > { %2667 = vmatpush.bf16.msrb.mxu3 %v4407_v16  ;;  %2680 = vmatpush.bf16.msrb.mxu0 %v4411_v39  ;;  %v5105_v16 = vld [vmem:[%s5669_s25 + $0x140] sm:$0xff] }
 0x99d   : > { %2693 = vmatpush.bf16.msra.mxu1 %v4415_v59  ;;  %2706 = vmatpush.bf16.msra.mxu2 %v4419_v33  ;;  %v5113_v39 = vld [vmem:[%s5669_s25 + $0x180] sm:$0xff]  ;;  %v5098_v59 = vld [vmem:[%s5669_s25 + $0x108] sm:$0xff] }
 0x99e   : > { %v5122_v33 = vld [vmem:[%s5669_s25 + $0x1c8] sm:$0xff] }
 0x9a6   : > { %4492 = vmatmul.msk.bf16.vlgmr.msra.gmra.mxu3 %vm646_vm2, %v6040_v60  ;;  %4493 = vmatmul.msk.bf16.vlgmr.msra.gmra.mxu0 %vm646_vm2, %v6040_v60 }
 0x9a7   : > { %4494 = vmatmul.msk.bf16.vlgmr.msrb.gmra.mxu1 %vm646_vm2, %v6040_v60  ;;  %4495 = vmatmul.msk.bf16.vlgmr.msrb.gmra.mxu2 %vm646_vm2, %v6040_v60 }
 0x9a8   : > { %3785 = vmatpush.bf16.msra.mxu0 %v5080_v34  ;;  %3798 = vmatpush.bf16.msrb.mxu1 %v5088_v35  ;;  %v5097_v34 = vld [vmem:[%s5669_s25 + $0x100] sm:$0xff] }
 0x9a9   : > { %3772 = vmatpush.bf16.msra.mxu3 %v5072_v36  ;;  %3811 = vmatpush.bf16.msrb.mxu2 %v5096_v37  ;;  %v5121_v35 = vld [vmem:[%s5669_s25 + $0x1c0] sm:$0xff] }
 0x9aa   : > { %v6163_v36 = vld [vmem:[%s5685_s21 + $0x2] sm:$0xff] }
 0x9ab   : > { %v2310_v37 = vperm.slane %v6163_v36, 1 }
 0x9ac   : > { %3786 = vmatpush.bf16.msra.mxu0 %v5079_v40  ;;  %3799 = vmatpush.bf16.msrb.mxu1 %v5087_v41  ;;  %v2311_v40 = vperm.slane %v6163_v36, 2 }
 0x9ad   : > { %3773 = vmatpush.bf16.msra.mxu3 %v5071_v42  ;;  %3812 = vmatpush.bf16.msrb.mxu2 %v5095_v43 }
 0x9b0   : > { %3787 = vmatpush.bf16.msra.mxu0 %v5078_v44  ;;  %3800 = vmatpush.bf16.msrb.mxu1 %v5086_v46 }
 0x9b1   : > { %3774 = vmatpush.bf16.msra.mxu3 %v5070_v47  ;;  %3813 = vmatpush.bf16.msrb.mxu2 %v5094_v48  ;;  %v2309_v47 = vperm.slane %v6163_v36, 0 }
 0x9b4   : > { %3788 = vmatpush.bf16.msra.mxu0 %v5077_v49  ;;  %3801 = vmatpush.bf16.msrb.mxu1 %v5085_v50  ;;  %v2312_v49 = vperm.slane %v6163_v36, 3  ;;  %v5144_v50 = vld [vmem:[%s5669_s25 + $0x278] sm:$0xff] }
 0x9b5   : > { %3775 = vmatpush.bf16.msra.mxu3 %v5069_v51  ;;  %3814 = vmatpush.bf16.msrb.mxu2 %v5093_v52  ;;  %v5152_v52 = vld [vmem:[%s5669_s25 + $0x2b8] sm:$0xff] }
 0x9b6   : > { %4496 = vmatmul.msk.bf16.vlgmr.msrb.gmra.mxu3 %vm646_vm2, %v6040_v60  ;;  %4497 = vmatmul.msk.bf16.vlgmr.msrb.gmra.mxu0 %vm646_vm2, %v6040_v60 }
 0x9b7   : > { %4498 = vmatmul.msk.bf16.vlgmr.msra.gmra.mxu1 %vm646_vm2, %v6040_v60  ;;  %4499 = vmatmul.msk.bf16.vlgmr.msra.gmra.mxu2 %vm646_vm2, %v6040_v60  ;;  %v5082_v60 = vld [vmem:[%s5669_s25 + $0x88] sm:$0xff] }
 0x9b8   : > { %3789 = vmatpush.bf16.msra.mxu0 %v5076_v53  ;;  %3802 = vmatpush.bf16.msrb.mxu1 %v5084_v54 }
 0x9b9   : > { %3776 = vmatpush.bf16.msra.mxu3 %v5068_v32  ;;  %3815 = vmatpush.bf16.msrb.mxu2 %v5092_v57 }
 0x9bc   : > { %3790 = vmatpush.bf16.msra.mxu0 %v5075_v58  ;;  %3803 = vmatpush.bf16.msrb.mxu1 %v5083_v61 }
 0x9bd   : > { %3777 = vmatpush.bf16.msra.mxu3 %v5067_v62  ;;  %3816 = vmatpush.bf16.msrb.mxu2 %v5091_v63  ;;  %v5143_v62 = vld [vmem:[%s5669_s25 + $0x270] sm:$0xff] }
 0x9c0   : > { %3791 = vmatpush.bf16.msra.mxu0 %v5074_v0  ;;  %3804 = vmatpush.bf16.msrb.mxu1 %v5082_v60  ;;  %v5151_v60 = vld [vmem:[%s5669_s25 + $0x2b0] sm:$0xff] }
 0x9c1   : > { %3778 = vmatpush.bf16.msra.mxu3 %v5066_v1  ;;  %3817 = vmatpush.bf16.msrb.mxu2 %v5090_v2  ;;  %v5136_v2 = vld [vmem:[%s5669_s25 + $0x238] sm:$0xff] }
 0x9c4   : > { %3792 = vmatpush.bf16.msra.mxu0 %v5073_v4  ;;  %3805 = vmatpush.bf16.msrb.mxu1 %v5081_v5  ;;  %v5160_v5 = vld [vmem:[%s5669_s25 + $0x2f8] sm:$0xff] }
 0x9c5   : > { %3779 = vmatpush.bf16.msra.mxu3 %v5065_v10  ;;  %3818 = vmatpush.bf16.msrb.mxu2 %v5089_v11  ;;  %v5150_v10 = vld [vmem:[%s5669_s25 + $0x2a8] sm:$0xff]  ;;  %v2314_v11 = vperm.slane %v6163_v36, 5 }
 0x9c8   : > { %3837 = vmatpush.bf16.msrb.mxu0 %v5112_v6  ;;  %3850 = vmatpush.bf16.msra.mxu1 %v5120_v8  ;;  %v5142_v8 = vld [vmem:[%s5669_s25 + $0x268] sm:$0xff] }
 0x9c9   : > { %3824 = vmatpush.bf16.msrb.mxu3 %v5104_v12  ;;  %3863 = vmatpush.bf16.msra.mxu2 %v5128_v38  ;;  %v2315_v38 = vperm.slane %v6163_v36, 6 }
 0x9cc   : > { %3838 = vmatpush.bf16.msrb.mxu0 %v5111_v13  ;;  %3851 = vmatpush.bf16.msra.mxu1 %v5119_v15  ;;  %v5135_v13 = vld [vmem:[%s5669_s25 + $0x230] sm:$0xff] }
 0x9cd   : > { %3825 = vmatpush.bf16.msrb.mxu3 %v5103_v21  ;;  %3864 = vmatpush.bf16.msra.mxu2 %v5127_v31  ;;  %v5159_v21 = vld [vmem:[%s5669_s25 + $0x2f0] sm:$0xff] }
 0x9d0   : > { %3839 = vmatpush.bf16.msrb.mxu0 %v5110_v20  ;;  %3852 = vmatpush.bf16.msra.mxu1 %v5118_v22  ;;  %v5141_v20 = vld [vmem:[%s5669_s25 + $0x260] sm:$0xff] }
 0x9d1   : > { %3826 = vmatpush.bf16.msrb.mxu3 %v5102_v23  ;;  %3865 = vmatpush.bf16.msra.mxu2 %v5126_v18  ;;  %v5149_v18 = vld [vmem:[%s5669_s25 + $0x2a0] sm:$0xff] }
 0x9d4   : > { %3840 = vmatpush.bf16.msrb.mxu0 %v5109_v24  ;;  %3853 = vmatpush.bf16.msra.mxu1 %v5117_v3  ;;  %v5134_v3 = vld [vmem:[%s5669_s25 + $0x228] sm:$0xff] }
 0x9d5   : > { %3827 = vmatpush.bf16.msrb.mxu3 %v5101_v25  ;;  %3866 = vmatpush.bf16.msra.mxu2 %v5125_v45  ;;  %v5158_v45 = vld [vmem:[%s5669_s25 + $0x2e8] sm:$0xff] }
 0x9d8   : > { %3841 = vmatpush.bf16.msrb.mxu0 %v5108_v26  ;;  %3854 = vmatpush.bf16.msra.mxu1 %v5116_v27  ;;  %v2313_v26 = vperm.slane %v6163_v36, 4 }
 0x9d9   : > { %3828 = vmatpush.bf16.msrb.mxu3 %v5100_v28  ;;  %3867 = vmatpush.bf16.msra.mxu2 %v5124_v17  ;;  %v5148_v17 = vld [vmem:[%s5669_s25 + $0x298] sm:$0xff] }
 0x9dc   : > { %3842 = vmatpush.bf16.msrb.mxu0 %v5107_v19  ;;  %3855 = vmatpush.bf16.msra.mxu1 %v5115_v7  ;;  %v2316_v19 = vperm.slane %v6163_v36, 7  ;;  %v5140_v7 = vld [vmem:[%s5669_s25 + $0x258] sm:$0xff] }
 0x9dd   : > { %3829 = vmatpush.bf16.msrb.mxu3 %v5099_v29  ;;  %3868 = vmatpush.bf16.msra.mxu2 %v5123_v30  ;;  %v5133_v29 = vld [vmem:[%s5669_s25 + $0x220] sm:$0xff] }
 0x9e0   : > { %3843 = vmatpush.bf16.msrb.mxu0 %v5106_v14  ;;  %3856 = vmatpush.bf16.msra.mxu1 %v5114_v9 }
 0x9e1   : > { %3830 = vmatpush.bf16.msrb.mxu3 %v5098_v59  ;;  %3869 = vmatpush.bf16.msra.mxu2 %v5122_v33 }
 0x9e4   : > { %3844 = vmatpush.bf16.msrb.mxu0 %v5105_v16  ;;  %3857 = vmatpush.bf16.msra.mxu1 %v5113_v39  ;;  %v5157_v39 = vld [vmem:[%s5669_s25 + $0x2e0] sm:$0xff] }
 0x9e5   : > { %3831 = vmatpush.bf16.msrb.mxu3 %v5097_v34  ;;  %3870 = vmatpush.bf16.msra.mxu2 %v5121_v35  ;;  %v5139_v34 = vld [vmem:[%s5669_s25 + $0x250] sm:$0xff] }
 0xa03   : > { %v2526_v41 = vpop.f32.mrf.mxu0 }
 0xa04   : > { %v2527_v42 = vadd.f32 %v2526_v41, %v2310_v37  ;;  %v2539_v43 = vpop.f32.mrf.mxu1  ;;  %v5147_v37 = vld [vmem:[%s5669_s25 + $0x290] sm:$0xff]  ;;  %v5132_v41 = vld [vmem:[%s5669_s25 + $0x218] sm:$0xff] }
 0xa05   : > { %v2540_v44 = vadd.f32 %v2539_v43, %v2311_v40 }
 0xa06   : > { %v2713_v46 = vmax.f32 %v2527_v42, 0.0  ;;  %v6195_v42 = vld [vmem:[%s5685_s21 + $0xa] sm:$0xff] }
 0xa07   : > { %v2714_v48 = vmax.f32 %v2540_v44, 0.0  ;;  %v5156_v44 = vld [vmem:[%s5669_s25 + $0x2d8] sm:$0xff] }
 0xa08   : > { %v2729_v51 = vpack.c.bf16 %v2713_v46, %v2713_v46 }
 0xa09   : > { %v2730_v53 = vpack.c.bf16 %v2714_v48, %v2714_v48  ;;  %v2513_v54 = vpop.f32.mrf.mxu3  ;;  %v5146_v48 = vld [vmem:[%s5669_s25 + $0x288] sm:$0xff] }
 0xa0a   : > { %v2514_v32 = vadd.f32 %v2513_v54, %v2309_v47  ;;  %v2552_v57 = vpop.f32.mrf.mxu2  ;;  %3793 = vmatmul.bf16.vlgmr.msra.gmra.mxu0 %v2729_v51  ;;  %v5138_v47 = vld [vmem:[%s5669_s25 + $0x248] sm:$0xff]  ;;  %v2319_v51 = vperm.slane %v6195_v42, 2  ;;  %v5155_v54 = vld [vmem:[%s5669_s25 + $0x2d0] sm:$0xff] }
 0xa0b   : > { %v2553_v58 = vadd.f32 %v2552_v57, %v2312_v49  ;;  %3806 = vmatmul.bf16.vlgmr.msrb.gmra.mxu1 %v2730_v53  ;;  %3889 = vmatpush.bf16.msra.mxu0 %v5144_v50  ;;  %v2528_v61 = vpop.f32.mrf.mxu0  ;;  %v2318_v49 = vperm.slane %v6195_v42, 1  ;;  %v5137_v57 = vld [vmem:[%s5669_s25 + $0x240] sm:$0xff] }
 0xa0c   : > { %v2712_v63 = vmax.f32 %v2514_v32, 0.0  ;;  %3902 = vmatpush.bf16.msrb.mxu1 %v5152_v52  ;;  %v2541_v0 = vpop.f32.mrf.mxu1  ;;  %v5131_v52 = vld [vmem:[%s5669_s25 + $0x210] sm:$0xff] }
 0xa0d   : > { %v2715_v1 = vmax.f32 %v2553_v58, 0.0 }
 0xa0e   : > { %v2728_v4 = vpack.c.bf16 %v2712_v63, %v2712_v63  ;;  %v5176_v63 = vld [vmem:[%s5669_s25 + $0x378] sm:$0xff] }
 0xa0f   : > { %v2731_v6 = vpack.c.bf16 %v2715_v1, %v2715_v1  ;;  %3890 = vmatpush.bf16.msra.mxu0 %v5143_v62  ;;  %v5145_v62 = vld [vmem:[%s5669_s25 + $0x280] sm:$0xff]  ;;  %v5130_v1 = vld [vmem:[%s5669_s25 + $0x208] sm:$0xff] }
 0xa10   : > { %3903 = vmatpush.bf16.msrb.mxu1 %v5151_v60  ;;  %3780 = vmatmul.bf16.vlgmr.msra.gmra.mxu3 %v2728_v4  ;;  %v5184_v60 = vld [vmem:[%s5669_s25 + $0x3b8] sm:$0xff]  ;;  %v5154_v4 = vld [vmem:[%s5669_s25 + $0x2c8] sm:$0xff] }
 0xa11   : > { %3819 = vmatmul.bf16.vlgmr.msrb.gmra.mxu2 %v2731_v6  ;;  %3876 = vmatpush.bf16.msra.mxu3 %v5136_v2  ;;  %v2515_v12 = vpop.f32.mrf.mxu3 }
 0xa12   : > { %3915 = vmatpush.bf16.msrb.mxu2 %v5160_v5  ;;  %v2554_v15 = vpop.f32.mrf.mxu2  ;;  %v2317_v5 = vperm.slane %v6195_v42, 0 }
 0xa13   : > { %3891 = vmatpush.bf16.msra.mxu0 %v5142_v8  ;;  %v2578_v31 = vpop.f32.mrf.mxu0  ;;  %v2320_v8 = vperm.slane %v6195_v42, 3  ;;  %v5129_v15 = vld [vmem:[%s5669_s25 + $0x200] sm:$0xff] }
 0xa14   : > { %3904 = vmatpush.bf16.msrb.mxu1 %v5150_v10  ;;  %v2579_v22 = vadd.f32 %v2578_v31, %v2314_v11  ;;  %v2591_v23 = vpop.f32.mrf.mxu1  ;;  %v5175_v11 = vld [vmem:[%s5669_s25 + $0x370] sm:$0xff] }
 0xa15   : > { %v2592_v24 = vadd.f32 %v2591_v23, %v2315_v38  ;;  %3877 = vmatpush.bf16.msra.mxu3 %v5135_v13  ;;  %v5183_v13 = vld [vmem:[%s5669_s25 + $0x3b0] sm:$0xff] }
 0xa16   : > { %v2717_v25 = vmax.f32 %v2579_v22, 0.0  ;;  %3916 = vmatpush.bf16.msrb.mxu2 %v5159_v21  ;;  %v5168_v22 = vld [vmem:[%s5669_s25 + $0x338] sm:$0xff] }
 0xa17   : > { %v2718_v27 = vmax.f32 %v2592_v24, 0.0  ;;  %3892 = vmatpush.bf16.msra.mxu0 %v5141_v20  ;;  %v5153_v20 = vld [vmem:[%s5669_s25 + $0x2c0] sm:$0xff]  ;;  %v5192_v24 = vld [vmem:[%s5669_s25 + $0x3f8] sm:$0xff] }
 0xa18   : > { %v2733_v28 = vpack.c.bf16 %v2717_v25, %v2717_v25  ;;  %3905 = vmatpush.bf16.msrb.mxu1 %v5149_v18 }
 0xa19   : > { %v2734_v14 = vpack.c.bf16 %v2718_v27, %v2718_v27  ;;  %3878 = vmatpush.bf16.msra.mxu3 %v5134_v3  ;;  %v2565_v9 = vpop.f32.mrf.mxu3  ;;  %v5182_v27 = vld [vmem:[%s5669_s25 + $0x3a8] sm:$0xff] }
 0xa1a   : > { %3917 = vmatpush.bf16.msrb.mxu2 %v5158_v45  ;;  %v2566_v30 = vadd.f32 %v2565_v9, %v2313_v26  ;;  %v2604_v16 = vpop.f32.mrf.mxu2  ;;  %3845 = vmatmul.bf16.vlgmr.msrb.gmra.mxu0 %v2733_v28  ;;  %v5174_v45 = vld [vmem:[%s5669_s25 + $0x368] sm:$0xff] }
 0xa1b   : > { %v2605_v59 = vadd.f32 %v2604_v16, %v2316_v19  ;;  %3858 = vmatmul.bf16.vlgmr.msra.gmra.mxu1 %v2734_v14  ;;  %3893 = vmatpush.bf16.msra.mxu0 %v5140_v7  ;;  %v2580_v33 = vpop.f32.mrf.mxu0  ;;  %v5167_v7 = vld [vmem:[%s5669_s25 + $0x330] sm:$0xff]  ;;  %v5173_v14 = vld [vmem:[%s5669_s25 + $0x360] sm:$0xff]  ;;  %v5166_v16 = vld [vmem:[%s5669_s25 + $0x328] sm:$0xff] }
 0xa1c   : > { %v2716_v35 = vmax.f32 %v2566_v30, 0.0  ;;  %3906 = vmatpush.bf16.msrb.mxu1 %v5148_v17  ;;  %v2593_v36 = vpop.f32.mrf.mxu1  ;;  %v5191_v17 = vld [vmem:[%s5669_s25 + $0x3f0] sm:$0xff] }
 0xa1d   : > { %v2719_v40 = vmax.f32 %v2605_v59, 0.0  ;;  %3879 = vmatpush.bf16.msra.mxu3 %v5133_v29  ;;  %v5181_v29 = vld [vmem:[%s5669_s25 + $0x3a0] sm:$0xff]  ;;  %v5190_v59 = vld [vmem:[%s5669_s25 + $0x3e8] sm:$0xff] }
 0xa1e   : > { %v2732_v43 = vpack.c.bf16 %v2716_v35, %v2716_v35  ;;  %3918 = vmatpush.bf16.msrb.mxu2 %v5157_v39  ;;  %v5180_v35 = vld [vmem:[%s5669_s25 + $0x398] sm:$0xff]  ;;  %v5165_v36 = vld [vmem:[%s5669_s25 + $0x320] sm:$0xff] }
 0xa1f   : > { %v2735_v46 = vpack.c.bf16 %v2719_v40, %v2719_v40  ;;  %3894 = vmatpush.bf16.msra.mxu0 %v5139_v34  ;;  %v5172_v34 = vld [vmem:[%s5669_s25 + $0x358] sm:$0xff]  ;;  %v5171_v40 = vld [vmem:[%s5669_s25 + $0x350] sm:$0xff] }
 0xa20   : > { %3907 = vmatpush.bf16.msrb.mxu1 %v5147_v37  ;;  %3832 = vmatmul.bf16.vlgmr.msrb.gmra.mxu3 %v2732_v43  ;;  %v5189_v37 = vld [vmem:[%s5669_s25 + $0x3e0] sm:$0xff] }
 0xa21   : > { %3871 = vmatmul.bf16.vlgmr.msra.gmra.mxu2 %v2735_v46  ;;  %3880 = vmatpush.bf16.msra.mxu3 %v5132_v41  ;;  %v2567_v50 = vpop.f32.mrf.mxu3  ;;  %v2322_v41 = vperm.slane %v6195_v42, 5  ;;  %v2323_v46 = vperm.slane %v6195_v42, 6 }
 0xa22   : > { %3919 = vmatpush.bf16.msrb.mxu2 %v5156_v44  ;;  %v2606_v53 = vpop.f32.mrf.mxu2  ;;  %v5179_v44 = vld [vmem:[%s5669_s25 + $0x390] sm:$0xff]  ;;  %v5188_v50 = vld [vmem:[%s5669_s25 + $0x3d8] sm:$0xff] }
 0xa23   : > { %3895 = vmatpush.bf16.msra.mxu0 %v5138_v47  ;;  %v2630_v32 = vpop.f32.mrf.mxu0 }
 0xa24   : > { %3908 = vmatpush.bf16.msrb.mxu1 %v5146_v48  ;;  %v2631_v58 = vadd.f32 %v2630_v32, %v2318_v49  ;;  %v2643_v61 = vpop.f32.mrf.mxu1  ;;  %v5164_v48 = vld [vmem:[%s5669_s25 + $0x318] sm:$0xff] }
 0xa25   : > { %v2644_v0 = vadd.f32 %v2643_v61, %v2319_v51  ;;  %3881 = vmatpush.bf16.msra.mxu3 %v5131_v52  ;;  %v5170_v52 = vld [vmem:[%s5669_s25 + $0x348] sm:$0xff]  ;;  %v5187_v61 = vld [vmem:[%s5669_s25 + $0x3d0] sm:$0xff] }
 0xa26   : > { %v2721_v2 = vmax.f32 %v2631_v58, 0.0  ;;  %3920 = vmatpush.bf16.msrb.mxu2 %v5155_v54  ;;  %v5178_v54 = vld [vmem:[%s5669_s25 + $0x388] sm:$0xff]  ;;  %v2321_v58 = vperm.slane %v6195_v42, 4 }
 0xa27   : > { %v2722_v6 = vmax.f32 %v2644_v0, 0.0  ;;  %3896 = vmatpush.bf16.msra.mxu0 %v5137_v57  ;;  %v5163_v57 = vld [vmem:[%s5669_s25 + $0x310] sm:$0xff] }
 0xa28   : > { %v2737_v10 = vpack.c.bf16 %v2721_v2, %v2721_v2  ;;  %3909 = vmatpush.bf16.msrb.mxu1 %v5145_v62  ;;  %v2324_v62 = vperm.slane %v6195_v42, 7 }
 0xa29   : > { %v2738_v12 = vpack.c.bf16 %v2722_v6, %v2722_v6  ;;  %3882 = vmatpush.bf16.msra.mxu3 %v5130_v1  ;;  %v2617_v38 = vpop.f32.mrf.mxu3  ;;  %v5177_v1 = vld [vmem:[%s5669_s25 + $0x380] sm:$0xff] }
 0xa2a   : > { %3921 = vmatpush.bf16.msrb.mxu2 %v5154_v4  ;;  %v2618_v21 = vadd.f32 %v2617_v38, %v2317_v5  ;;  %v2656_v31 = vpop.f32.mrf.mxu2  ;;  %3897 = vmatmul.bf16.vlgmr.msra.gmra.mxu0 %v2737_v10  ;;  %v5162_v5 = vld [vmem:[%s5669_s25 + $0x308] sm:$0xff] }
 0xa2b   : > { %3941 = vmatpush.bf16.msrb.mxu0 %v5176_v63  ;;  %v2657_v23 = vadd.f32 %v2656_v31, %v2320_v8  ;;  %3910 = vmatmul.bf16.vlgmr.msrb.gmra.mxu1 %v2738_v12  ;;  %v2632_v18 = vpop.f32.mrf.mxu0  ;;  %v5169_v63 = vld [vmem:[%s5669_s25 + $0x340] sm:$0xff]  ;;  %v5186_v8 = vld [vmem:[%s5669_s25 + $0x3c8] sm:$0xff] }
 0xa2c   : > { %3954 = vmatpush.bf16.msra.mxu1 %v5184_v60  ;;  %v2720_v3 = vmax.f32 %v2618_v21, 0.0  ;;  %v2645_v25 = vpop.f32.mrf.mxu1  ;;  %v5161_v12 = vld [vmem:[%s5669_s25 + $0x300] sm:$0xff] }
 0xa2d   : > { %v2723_v26 = vmax.f32 %v2657_v23, 0.0  ;;  %3883 = vmatpush.bf16.msra.mxu3 %v5129_v15 }
 0xa2e   : > { %v2736_v19 = vpack.c.bf16 %v2720_v3, %v2720_v3  ;;  %3922 = vmatpush.bf16.msrb.mxu2 %v5153_v20 }
 0xa2f   : > { %3942 = vmatpush.bf16.msrb.mxu0 %v5175_v11  ;;  %v2739_v28 = vpack.c.bf16 %v2723_v26, %v2723_v26 }
 0xa30   : > { %3955 = vmatpush.bf16.msra.mxu1 %v5183_v13  ;;  %3884 = vmatmul.bf16.vlgmr.msra.gmra.mxu3 %v2736_v19  ;;  %v5185_v13 = vld [vmem:[%s5669_s25 + $0x3c0] sm:$0xff]  ;;  %s6371_s25 = sld [smem:[#allocation9_spill]] (!%p5012_p1) }
 0xa31   : > { %3928 = vmatpush.bf16.msrb.mxu3 %v5168_v22  ;;  %3923 = vmatmul.bf16.vlgmr.msrb.gmra.mxu2 %v2739_v28  ;;  %v2619_v9 = vpop.f32.mrf.mxu3  ;;  %v5368_v28 = vld [vmem:[%s5685_s21 + $0x12] ss:$0 sm:$0xff] }
 0xa32   : > { %3967 = vmatpush.bf16.msra.mxu2 %v5192_v24  ;;  %v2658_v30 = vpop.f32.mrf.mxu2 }
 0xa33   : > { %3943 = vmatpush.bf16.msrb.mxu0 %v5174_v45  ;;  %v2682_v39 = vpop.f32.mrf.mxu0 }
 0xa34   : > { %3956 = vmatpush.bf16.msra.mxu1 %v5182_v27  ;;  %v2695_v33 = vpop.f32.mrf.mxu1  ;;  %v2683_v53 = vadd.f32 %v2682_v39, %v2322_v41 }
 0xa35   : > { %3929 = vmatpush.bf16.msrb.mxu3 %v5167_v7  ;;  %v2696_v32 = vadd.f32 %v2695_v33, %v2323_v46 }
 0xa36   : > { %3968 = vmatpush.bf16.msra.mxu2 %v5191_v17  ;;  %v2725_v0 = vmax.f32 %v2683_v53, 0.0  ;;  %p4063_p2 = scmp.eq.s32.totalorder (!%p5012_p1), %s6371_s25, 0 }
 0xa37   : > { %3944 = vmatpush.bf16.msrb.mxu0 %v5173_v14  ;;  %v2726_v2 = vmax.f32 %v2696_v32, 0.0 }
 0xa38   : > { %3957 = vmatpush.bf16.msra.mxu1 %v5181_v29  ;;  %v2741_v11 = vpack.c.bf16 %v2725_v0, %v2725_v0 }
 0xa39   : > { %3930 = vmatpush.bf16.msrb.mxu3 %v5166_v16  ;;  %v2669_v43 = vpop.f32.mrf.mxu3  ;;  %v2742_v42 = vpack.c.bf16 %v2726_v2, %v2726_v2 }
 0xa3a   : > { %3969 = vmatpush.bf16.msra.mxu2 %v5190_v59  ;;  %v2708_v47 = vpop.f32.mrf.mxu2  ;;  %v2670_v6 = vadd.f32 %v2669_v43, %v2321_v58 }
 0xa3b   : > { %3945 = vmatpush.bf16.msrb.mxu0 %v5172_v34  ;;  %v2684_v49 = vpop.f32.mrf.mxu0  ;;  %v2709_v10 = vadd.f32 %v2708_v47, %v2324_v62 }
 0xa3c   : > { %3958 = vmatpush.bf16.msra.mxu1 %v5180_v35  ;;  %v2697_v51 = vpop.f32.mrf.mxu1  ;;  %v2724_v38 = vmax.f32 %v2670_v6, 0.0 }
 0xa3d   : > { %3931 = vmatpush.bf16.msrb.mxu3 %v5165_v36  ;;  %v2727_v15 = vmax.f32 %v2709_v10, 0.0 }
 0xa3e   : > { %3970 = vmatpush.bf16.msra.mxu2 %v5189_v37  ;;  %v2740_v21 = vpack.c.bf16 %v2724_v38, %v2724_v38 }
 0xa3f   : > { %3946 = vmatpush.bf16.msrb.mxu0 %v5171_v40  ;;  %v2743_v31 = vpack.c.bf16 %v2727_v15, %v2727_v15 }
 0xa40   : > { %3959 = vmatpush.bf16.msra.mxu1 %v5179_v44 }
 0xa41   : > { %3932 = vmatpush.bf16.msrb.mxu3 %v5164_v48  ;;  %v2671_v60 = vpop.f32.mrf.mxu3 }
 0xa42   : > { %3971 = vmatpush.bf16.msra.mxu2 %v5188_v50  ;;  %v2710_v4 = vpop.f32.mrf.mxu2 }
 0xa43   : > { %3947 = vmatpush.bf16.msrb.mxu0 %v5170_v52 }
 0xa44   : > { %3960 = vmatpush.bf16.msra.mxu1 %v5178_v54 }
 0xa45   : > { %3933 = vmatpush.bf16.msrb.mxu3 %v5163_v57 }
 0xa46   : > { %3972 = vmatpush.bf16.msra.mxu2 %v5187_v61 }
 0xa47   : > { %3948 = vmatpush.bf16.msrb.mxu0 %v5169_v63 }
 0xa48   : > { %3961 = vmatpush.bf16.msra.mxu1 %v5177_v1 }
 0xa49   : > { %3934 = vmatpush.bf16.msrb.mxu3 %v5162_v5 }
 0xa4a   : > { %3973 = vmatpush.bf16.msra.mxu2 %v5186_v8  ;;  %3949 = vmatmul.bf16.vlgmr.msrb.gmra.mxu0 %v2741_v11 }
 0xa4b   : > { %3962 = vmatmul.bf16.vlgmr.msra.gmra.mxu1 %v2742_v42 }
 0xa4d   : > { %3935 = vmatpush.bf16.msrb.mxu3 %v5161_v12 }
 0xa4e   : > { %3974 = vmatpush.bf16.msra.mxu2 %v5185_v13 }
 0xa50   : > { %3936 = vmatmul.bf16.vlgmr.msrb.gmra.mxu3 %v2740_v21 }
 0xa51   : > { %3975 = vmatmul.bf16.vlgmr.msra.gmra.mxu2 %v2743_v31 }
 0xa87   : > { %v3794_v20 = vpop.f32.mrf.mxu0 }
 0xa88   : > { %v3807_v22 = vpop.f32.mrf.mxu1 }
 0xa8f   : > { %v3796_v23 = vpop.f32.mrf.mxu0 }
 0xa90   : > { %v3809_v18 = vpop.f32.mrf.mxu1 }
 0xa93   : > { %v3781_v24 = vpop.f32.mrf.mxu3 }
 0xa94   : > { %v3820_v3 = vpop.f32.mrf.mxu2  ;;  %v3782_v9 = vadd.f32 %v5368_v28, %v3781_v24 }
 0xa96   : > { %v3795_v16 = vadd.f32 %v3794_v20, %v3782_v9 }
 0xa97   : > { %v3846_v25 = vpop.f32.mrf.mxu0 }
 0xa98   : > { %v3859_v45 = vpop.f32.mrf.mxu1  ;;  %v3808_v33 = vadd.f32 %v3807_v22, %v3795_v16 }
 0xa9a   : > { %v3821_v36 = vadd.f32 %v3820_v3, %v3808_v33  ;;  %v5369_v3 = vld [vmem:[%s5685_s21 + $0x15] ss:$0 sm:$0xff] }
 0xa9b   : > { %v3783_v26 = vpop.f32.mrf.mxu3 }
 0xa9c   : > { %v3822_v27 = vpop.f32.mrf.mxu2 }
 0xa9f   : > { %v3848_v19 = vpop.f32.mrf.mxu0 }
 0xaa0   : > { %v3861_v7 = vpop.f32.mrf.mxu1 }
 0xaa3   : > { %v3833_v17 = vpop.f32.mrf.mxu3 }
 0xaa4   : > { %v3872_v14 = vpop.f32.mrf.mxu2  ;;  %v3834_v41 = vadd.f32 %v3833_v17, %v3821_v36 }
 0xaa6   : > { %v3847_v43 = vadd.f32 %v3846_v25, %v3834_v41 }
 0xaa7   : > { %v3898_v29 = vpop.f32.mrf.mxu0 }
 0xaa8   : > { %v3911_v30 = vpop.f32.mrf.mxu1  ;;  %v3860_v47 = vadd.f32 %v3859_v45, %v3847_v43  ;;  %v5370_v45 = vld [vmem:[%s5685_s21 + $0x16] ss:$0 sm:$0xff] }
 0xaaa   : > { %v3873_v48 = vadd.f32 %v3872_v14, %v3860_v47 }
 0xaab   : > { %v3835_v39 = vpop.f32.mrf.mxu3 }
 0xaac   : > { %v3874_v59 = vpop.f32.mrf.mxu2 }
 0xaaf   : > { %v3900_v34 = vpop.f32.mrf.mxu0 }
 0xab0   : > { %v3913_v35 = vpop.f32.mrf.mxu1 }
 0xab3   : > { %v3885_v37 = vpop.f32.mrf.mxu3 }
 0xab4   : > { %v3924_v40 = vpop.f32.mrf.mxu2  ;;  %v3886_v49 = vadd.f32 %v3885_v37, %v3873_v48 }
 0xab6   : > { %v3899_v52 = vadd.f32 %v3898_v29, %v3886_v49 }
 0xab8   : > { %v3912_v53 = vadd.f32 %v3911_v30, %v3899_v52 }
 0xaba   : > { %v3925_v57 = vadd.f32 %v3924_v40, %v3912_v53 }
 0xabb   : > { %v3887_v44 = vpop.f32.mrf.mxu3 }
 0xabc   : > { %v3926_v46 = vpop.f32.mrf.mxu2 }
 0xac7   : > { %v3950_v50 = vpop.f32.mrf.mxu0 }
 0xac8   : > { %v3963_v51 = vpop.f32.mrf.mxu1 }
 0xacf   : > { %v3952_v54 = vpop.f32.mrf.mxu0 }
 0xad0   : > { %v3965_v32 = vpop.f32.mrf.mxu1 }
 0xad3   : > { %v3937_v58 = vpop.f32.mrf.mxu3 }
 0xad4   : > { %v3938_v61 = vadd.f32 %v3937_v58, %v3925_v57  ;;  %v3976_v62 = vpop.f32.mrf.mxu2 }
 0xad6   : > { %v3951_v63 = vadd.f32 %v3950_v50, %v3938_v61 }
 0xad8   : > { %v3964_v0 = vadd.f32 %v3963_v51, %v3951_v63 }
 0xada   : > { %v3977_v60 = vadd.f32 %v3976_v62, %v3964_v0 }
 0xadb   : > { %v3939_v1 = vpop.f32.mrf.mxu3 }
 0xadc   : > { %v3980_v2 = vadd.f32 %v3977_v60, %v6033_v56  ;;  %v3978_v4 = vpop.f32.mrf.mxu2 }
 0xade   : > { %v3983_v5 = vsel %vm646_vm2, %v3980_v2, 0.0  ;;  %v3987_v6 = vmul.f32 %v3980_v2, %v3980_v2 }
 0xadf   : > { %3984 = vadd.xlane.f32.xlu0 %v3983_v5 }
 0xae0   : > { %v3988_v8 = vsel %vm646_vm2, %v3987_v6, 0.0 }
 0xae1   : > { %3989 = vadd.xlane.f32.xlu1 %v3988_v8 }
 0xb52   : > { %v3985_v10 = vpop.xlane.xlu0 %3984 }
 0xb53   : > { %v3986_v11 = vmul.f32 %v3985_v10, %v5992_v55 }
 0xb54   : > { %v3990_v42 = vpop.xlane.xlu1 %3989 }
 0xb55   : > { %v3992_v12 = vmul.f32 %v3986_v11, %v3986_v11  ;;  %v3991_v38 = vmul.f32 %v3990_v42, %v5992_v55  ;;  %v3995_v24 = vsub.f32 %v3980_v2, %v3986_v11 }
 0xb57   : > { %v3993_v13 = vsub.f32 %v3991_v38, %v3992_v12 }
 0xb59   : > { %v3994_v15 = vmax.f32 %v3993_v13, 0.0 }
 0xb5b   : > { %v3996_v56 = vadd.f32 1e-05, %v3994_v15 }
 0xb5d   : > { %5391 = vrsqrt.f32 %v3996_v56  ;;  %vm4003_vm13 = vweird.f32 %v3996_v56 }
 0xb63   : > { %v5392_v21 = vpop.eup %5391 }
 0xb64   : > { %v3998_v31 = vmul.f32 %v5392_v21, %v3996_v56  ;;  %vm4004_vm12 = vweird.f32 %v5392_v21 }
 0xb65   : > { %vm4005_vm14 = vmor %vm4003_vm13, %vm4004_vm12 }
 0xb66   : > { %v3999_v20 = vmul.f32 %v5392_v21, %v3998_v31 }
 0xb68   : > { %v4000_v22 = vmul.f32 0.5, %v3999_v20 }
 0xb6a   : > { %v4001_v23 = vsub.f32 1.5, %v4000_v22 }
 0xb6c   : > { %v4002_v18 = vmul.f32 %v5392_v21, %v4001_v23 }
 0xb6e   : > { %v4006_v25 = vsel %vm4005_vm14, %v5392_v21, %v4002_v18 }
 0xb6f   : > { %v4007_v26 = vmul.f32 %v4006_v25, %v3995_v24 }
 0xb71   : > { %v4011_v55 = vmul.f32 %v5369_v3, %v4007_v26  ;;  %4020 = sbr.rel (%p5012_p1) target bundleno = 3096 (0xc18), region = 68 }
 0xb73   : > { %v4015_v27 = vadd.f32 %v5370_v45, %v4011_v55 }
 0xb75   : > { %4016 = vst.msk [vmem:[#allocation2] sm:$0xff] %vm646_vm2, %v4015_v27 }
 0xb76   : > { %v5194_v19 = vld [vmem:[%s5680_s1 + $0x8] sm:$0xff]  ;;  %v5193_v7 = vld [vmem:[%s5680_s1] sm:$0xff]  ;;  %v4021_v28 = vpack.c.bf16 %v4015_v27, %v4015_v27  ;;  %v4058_v39 = vlaneseq  ;;  %s4064_s16 = scalar_select %p4063_p2, 1, 0 }
 0xb77   : > { %4051 = vmatpush.bf16.msra.mxu0 %v5194_v19  ;;  %v5394_v17 = vld [vmem:[%s584_s15] ss:$0 sm:$0xff] }
 0xb78   : > { %v4059_v33 = vand.u32 127, %v4058_v39  ;;  %v4065_v36 = vstv %s4064_s16 }
 0xb7a   : > { %vm4060_vm15 = vcmp.ge.s32.totalorder %v4059_v33, 4  ;;  %vm4061_vm0 = vcmp.lt.s32.totalorder %v4059_v33, 8 }
 0xb7b   : > { %4052 = vmatpush.bf16.msra.mxu0 %v5193_v7  ;;  %vm4062_vm1 = vmand %vm4060_vm15, %vm4061_vm0 }
 0xb7e   : > { %5021 = vmatmul.msk.bf16.vlgmr.msra.gmra.mxu0 %vm646_vm2, %v4021_v28  ;;  %vm4066_vm2 = vcmp.eq.s32.totalorder %v4065_v36, 1 }
 0xb7f   : > { %vm4067_vm3 = vmand %vm4066_vm2, %vm4062_vm1 }
 0xbfb   : > { %v4054_v14 = vpop.f32.mrf.mxu0 }
 0xbfc   : > { %v4055_v9 = vadd.f32 %v5394_v17, %v4054_v14 }
 0xbfe   : > { %v4069_v29 = vmin.f32 %v4055_v9, 20.0  ;;  %vm4068_vm5 = vcmp.gt.f32.partialorder %v4055_v9, 20.0 }
 0xc00   : > { %v4070_v30 = vmul.f32 1.442695, %v4069_v29 }
 0xc02   : > { %5395 = vpow2.f32 %v4070_v30 }
 0xc03   : > { %v4056_v16 = vpop.f32.mrf.mxu0 }
 0xc08   : > { %v5396_v59 = vpop.eup %5395 }
 0xc09   : > { %v4072_v34 = vadd.f32 1.0, %v5396_v59  ;;  %v4075_v35 = vmul.f32 -0.5, %v5396_v59  ;;  %v4078_v40 = vand.u32 2147483647, %v5396_v59 }
 0xc0b   : > { %5397 = vlog2.f32 %v4072_v34  ;;  %v4076_v37 = vadd.f32 1.0, %v4075_v35  ;;  %vm4079_vm4 = vcmp.lt.f32.partialorder %v4078_v40, 0.0004427343 }
 0xc0d   : > { %v4077_v44 = vmul.f32 %v5396_v59, %v4076_v37 }
 0xc11   : > { %v5398_v41 = vpop.eup %5397 }
 0xc12   : > { %v4074_v43 = vmul.f32 0.6931472, %v5398_v41 }
 0xc14   : > { %v4080_v46 = vsel %vm4079_vm4, %v4077_v44, %v4074_v43 }
 0xc15   : > { %v4081_v47 = vsel %vm4068_vm5, %v4055_v9, %v4080_v46 }
 0xc16   : > { %v4082_v48 = vsel %vm4067_vm3, %v4081_v47, %v4055_v9 }
 0xc17   : > { %4083 = vst [vmem:[%s524_s3] sm:$0xff] %v4082_v48 }
 0xc18 PF: > { %s6372_s12 = sld [smem:[#allocation9_spill]]  ;;  %s4097_s22 = sshll.u32 %s524_s3, 4  ;;  %s4098_s22 = int_to_ptr.vmem [resolvable:$true] %s4097_s22 }
 0xc19   : > { %s6373_s15 = sld [smem:[#allocation7_spill]] }
 0xc1a   : > { %s6375_s28 = sld [smem:[#allocation24_spill]] }
 0xc1e   : > { %s5023_s2 = sshll.u32 %s6372_s12, 3 }
 0xc1f   : > { %s6376_s10 = sand.u32 1, %s6373_s15  }
 0xc20   : > { %s4095_s29 = scalar_lea.hbm %s6375_s28, %s5023_s2  ;;  %s4085_s20 = scalar_lea.sflag [#allocation4], %s6376_s10 }
 0xc21   : > { %s4099_s18 = sshll.u32 %s4095_s29, 4  ;;  %s5419_s19 = scalar_lea.hbm %s6375_s28, 16  ;;  %s4100_s18 = int_to_ptr.hbm [resolvable:$true] %s4099_s18 }
 0xc22   : > { %s5413_s14 = sshra.s32 %s4100_s18, 4  ;;  %s5414_s14 = int_to_ptr.hbm [resolvable:$true] %s5413_s14 }
 0xc23   : > { %s5415_s26 = scalar_lea.hbm %s5414_s14, 8  ;;  %p5420_p7 = scmp.lt.s32.totalorder %s5414_s14, %s6375_s28 }
 0xc24   : > { %p5416_p4 = scmp.ne.s32.totalorder %s5414_s14, %s5415_s26  ;;  %p5421_p8 = scmp.lt.s32.totalorder %s5419_s19, %s5415_s26 }
 0xc26   : > { %p5417_p5 = pnand %p5416_p4, %p5610_p3  ;;  %p5422_p10 = por %p5421_p8, %p5420_p7 }
 0xc28   : > { %p5418_p6 = pneg %p5417_p5 }
 0xc2a   : > { %p5423_p11 = pnand %p5422_p10, %p5418_p6 }
 0xc2c   : > { %5426 = shalt.err (!%p5423_p11)
}
 0xc2d   : > { %5197 = dma.vmem_to_hbm [thread:$0]  (%p5610_p3), %s4098_s22, 128, %s4100_s18, %s4085_s20  }
 0xc2e PF: > { %s6377_s11 = sld [smem:[#allocation12_spill]] }
 0xc2f   : > { %s6378_s3 = sld [smem:[#allocation6_spill]] }
 0xc34   : > { %p5203_p12 = scmp.ge.s32.totalorder %s6377_s11, 2 }
 0xc35   : > { %s4111_s30 = sand.u32 1, %s6378_s3  }
 0xc36   : > { %p5200_p13 = pnand %p5203_p12, %p5620_p9  ;;  %s4112_s21 = scalar_lea.sflag [#allocation4], %s4111_s30 }
 0xc38   : > { %p5201_p0 = pneg %p5200_p13 }
 0xc3a   : > { %5460 = dma.done.wait (%p5201_p0), %s4112_s21, 128  }
 0xc3b   : > { %5462 = vsyncadd (%p5201_p0), %s4112_s21, 4294967168  ;;  %s23_s20 = sadd.s32 1, %s6377_s11   ;;  %s6380_s13 = sld [smem:[#allocation7_spill]] }
 0xc3c   : > { %p20_p1 = scmp.ge.s32.totalorder %s23_s20, 6   ;;  %s6381_s14 = sld [smem:[#allocation8_spill]] }
 0xc3d   : > { %s6382_s15 = sld [smem:[#allocation17_spill]] }
 0xc3e   : > { %s6383_s16 = sld [smem:[#allocation10_spill]]  ;;  %22 = sbr.rel (!%p20_p1) target bundleno = 11 (0xb), region = 127 }
 0xc3f   : > { %s6384_s17 = sld [smem:[#allocation11_spill]] }
 0xc40   : > { %s6385_s18 = sld [smem:[#allocation13_spill]] }
 0xc41   : > { %s6386_s19 = sld [smem:[#allocation15_spill]] }
 0xc43   :  { %4118 = vsyncpa [#allocation4], 1 }
 0xc44   :  { %4120 = vsyncpa [#allocation4 + $0x1], 1 }

</bundles_post_ra>
